<compile_context>
chip_gen: v5e
topology: v5e:2x2
jax: 0.10.0
libtpu: 0.0.40
codegen_flags: <defaults>
</compile_context>

<pallas_src>
import functools

import jax
import jax.numpy as jnp
from jax.experimental import pallas as pl
from jax.experimental.pallas import tpu as pltpu


_NEG_FLOOR = -1e30          # finite floor for the online-softmax running max
_VMEM_CAP = 48 << 20        # stay well inside v7x's 64 MiB physical VMEM


# -----------------------------------------------------------------------------
# Small helpers
# -----------------------------------------------------------------------------
def _round_up(x, m):
    return ((x + m - 1) // m) * m


def _pad_cols(w, width):
    return w if w.shape[1] == width else jnp.pad(w, ((0, 0), (0, width - w.shape[1])))


@functools.lru_cache(maxsize=None)
def _single_buffer_consts_supported():
    """Probe whether pipeline_mode=pl.Buffered(1) is available (single-buffered
    constants save VMEM, most valuable on v7x).  Falls back silently."""
    try:
        def _k(c_ref, x_ref, o_ref, acc_ref):
            @pl.when(pl.program_id(1) == 0)
            def _():
                acc_ref[...] = jnp.zeros_like(acc_ref)
            acc_ref[...] += x_ref[...] + c_ref[...]
            o_ref[...] = acc_ref[...]

        f = pl.pallas_call(
            _k, grid=(2, 2),
            in_specs=[pl.BlockSpec((8, 128), lambda i, j: (0, 0),
                                   pipeline_mode=pl.Buffered(1)),
                      pl.BlockSpec((8, 128), lambda i, j: (i, j))],
            out_specs=pl.BlockSpec((8, 128), lambda i, j: (i, 0)),
            out_shape=jax.ShapeDtypeStruct((16, 128), jnp.float32),
            scratch_shapes=[pltpu.VMEM((8, 128), jnp.float32)],
            compiler_params=pltpu.CompilerParams(
                dimension_semantics=("parallel", "arbitrary")))
        jax.block_until_ready(f(jnp.ones((8, 128), jnp.float32),
                                jnp.ones((16, 256), jnp.float32)))
        return True
    except Exception:
        return False


def _const_spec(shape):
    nd = len(shape)
    idx = lambda *args, _nd=nd: (0,) * _nd
    if _single_buffer_consts_supported():
        return pl.BlockSpec(shape, idx, pipeline_mode=pl.Buffered(1))
    return pl.BlockSpec(shape, idx)


def _plan_stage(n, din, dout, att_w, score_rows, compute_dtype, tile_n, token_splits):
    """Token tile / padding / scoped-VMEM budget for one stage kernel."""
    dbytes = jnp.dtype(compute_dtype).itemsize
    if tile_n is None:
        # ~8 MiB budget for the double-buffered streaming x tile
        tile_n = (8 << 20) // max(1, 2 * din * dbytes)
    tn = max(128, min(2048, _round_up(tile_n, 128)))
    tn = min(tn, _round_up(n, 128))

    def vmem_need(tn_):
        # pessimistic: count constants double-buffered even when Buffered(1) holds
        const_b = (din * dout * dbytes + dout * 4
                   + dout * att_w * dbytes + att_w * 4
                   + score_rows * (att_w // 2) * dbytes + 1024)
        stream_b = 2 * (tn_ * din * dbytes + tn_ * 4)      # x in + lane-dense aux out
        scratch_b = (dout + 8) * 4
        return 2 * const_b + stream_b + scratch_b + (12 << 20)

    while vmem_need(tn) > _VMEM_CAP and tn > 128:
        tn -= 128
    n_pad = _round_up(n, tn * token_splits)
    tiles_per_core = n_pad // (tn * token_splits)
    vmem_limit = int(min(max(vmem_need(tn), 32 << 20), _VMEM_CAP))
    return tn, n_pad, tiles_per_core, vmem_limit


def _pack_attention(ga, aux_ga, compute_dtype):
    """Fuse the gated-attention projections into one wide matmul.

    watt columns: [wa (| wa_aux) | pad | wb (| wb_aux) | pad]  -- the (a, aux-a)
    pair is padded jointly to a multiple of 128 (same for b), so the in-kernel
    half-split stays lane aligned without per-block 128 padding.
    wsc rows: main / aux score weights laid out over the gate columns.
    """
    hidden = ga['wa'].shape[1]
    if aux_ga is not None:
        ha = _round_up(2 * hidden, 128)
        wa = _pad_cols(jnp.concatenate([ga['wa'], aux_ga['wa']], axis=1), ha)
        wb = _pad_cols(jnp.concatenate([ga['wb'], aux_ga['wb']], axis=1), ha)
        ba = _pad_cols(jnp.concatenate([ga['ba'], aux_ga['ba']], axis=1), ha)
        bb = _pad_cols(jnp.concatenate([ga['bb'], aux_ga['bb']], axis=1), ha)
        wsc = jnp.zeros((2, ha), jnp.float32)
        wsc = wsc.at[0, :hidden].set(ga['wc'][:, 0])
        wsc = wsc.at[1, hidden:2 * hidden].set(aux_ga['wc'][:, 0])
        bsc = jnp.concatenate([ga['bc'], aux_ga['bc']], axis=0)          # (2, 1)
    else:
        ha = _round_up(hidden, 128)
        wa = _pad_cols(ga['wa'], ha)
        wb = _pad_cols(ga['wb'], ha)
        ba = _pad_cols(ga['ba'], ha)
        bb = _pad_cols(ga['bb'], ha)
        wsc = jnp.zeros((1, ha), jnp.float32).at[0, :hidden].set(ga['wc'][:, 0])
        bsc = ga['bc']                                                    # (1, 1)
    watt = jnp.concatenate([wa, wb], axis=1)          # (Dout, 2*ha)
    batt = jnp.concatenate([ba, bb], axis=1)          # (1, 2*ha)
    return (watt.astype(compute_dtype), batt.astype(jnp.float32),
            wsc.astype(compute_dtype), bsc.astype(jnp.float32))


# -----------------------------------------------------------------------------
# Pallas kernels
# -----------------------------------------------------------------------------
def _stage_tile(x_ref, wfc_ref, bfc_ref, watt_ref, batt_ref, wsc_ref, bsc_ref,
                m_sc, l_sc, acc_sc, *, token_offset, n_valid):
    """fc+ReLU, fused gated attention, online-softmax pooling for one token tile.

    Returns the lane-dense score rows s: [rows, tn] (row 0 = main, row 1 = aux).
    """
    x = x_ref[0]                                            # [tn, Din]
    tn = x.shape[0]

    lane = jax.lax.broadcasted_iota(jnp.int32, (1, tn), 1) + token_offset
    valid = lane < n_valid                                  # [1, tn]

    # fc_*_mag : Linear + ReLU (MXU, f32 accumulation)
    h = jnp.dot(x, wfc_ref[...], preferred_element_type=jnp.float32) + bfc_ref[...]
    h = jnp.maximum(h, 0.0)                                 # [tn, Dout] f32

    # fused gated-attention projections: one wide MXU matmul ([a|a_aux|b|b_aux])
    t = jnp.dot(h.astype(watt_ref.dtype), watt_ref[...],
                preferred_element_type=jnp.float32) + batt_ref[...]
    half = t.shape[1] // 2
    tg = t.astype(wsc_ref.dtype)                            # bf16 gates on bf16 path
    ag = jnp.tanh(tg[:, :half]) * jax.nn.sigmoid(tg[:, half:])   # [tn, half]

    # attention_c (+ aux): lane-dense scores via wsc . ag^T on the MXU -> [rows, tn]
    s = jax.lax.dot_general(wsc_ref[...], ag, (((1,), (1,)), ((), ())),
                            preferred_element_type=jnp.float32) + bsc_ref[...]
    s = jnp.where(valid, s, -jnp.inf)

    # online softmax + attention pooling (flash-style running max / sum)
    s_main = s[0:1, :]                                      # [1, tn]
    m_prev = m_sc[...]
    m_new = jnp.maximum(m_prev, jnp.max(s_main, axis=-1, keepdims=True))
    alpha = jnp.exp(m_prev - m_new)
    p = jnp.exp(s_main - m_new)                             # [1, tn]; 0 on padding
    l_sc[...] = alpha * l_sc[...] + jnp.sum(p, axis=-1, keepdims=True)
    acc_sc[...] = alpha * acc_sc[...] + jnp.dot(p, h, preferred_element_type=jnp.float32)
    m_sc[...] = m_new
    return s


def _stage_aux_kernel(x_ref, wfc_ref, bfc_ref, watt_ref, batt_ref, wsc_ref, bsc_ref,
                      aux_ref, m_ref, l_ref, acc_ref,
                      m_sc, l_sc, acc_sc, *, tiles_per_core, n_valid):
    n_id = pl.program_id(2)

    @pl.when(n_id == 0)
    def _():
        m_sc[...] = jnp.full_like(m_sc, _NEG_FLOOR)   # finite floor: no NaN if a
        l_sc[...] = jnp.zeros_like(l_sc)              # whole chunk is padding
        acc_sc[...] = jnp.zeros_like(acc_sc)

    tn = x_ref.shape[1]
    tok0 = (pl.program_id(1) * tiles_per_core + n_id) * tn
    s = _stage_tile(x_ref, wfc_ref, bfc_ref, watt_ref, batt_ref, wsc_ref, bsc_ref,
                    m_sc, l_sc, acc_sc, token_offset=tok0, n_valid=n_valid)

    # raw aux attention scores, lane-dense (unmasked vector stores)
    aux_ref[...] = s[1:2, :].reshape(aux_ref.shape)

    @pl.when(n_id == tiles_per_core - 1)
    def _():
        m_ref[...] = m_sc[...].reshape(m_ref.shape)
        l_ref[...] = l_sc[...].reshape(l_ref.shape)
        acc_ref[...] = acc_sc[...].reshape(acc_ref.shape)


def _final_stage_kernel(x_ref, wfc_ref, bfc_ref, watt_ref, batt_ref, wsc_ref, bsc_ref,
                        m12_ref, wcls_ref, bcls_ref,
                        logits_ref, prob_ref,
                        m_sc, l_sc, acc_sc, *, n_valid):
    """High-magnification stage (no aux) fused with M1+M2+M3, classify head and
    the output softmax."""
    n_id = pl.program_id(1)

    @pl.when(n_id == 0)
    def _():
        m_sc[...] = jnp.full_like(m_sc, _NEG_FLOOR)
        l_sc[...] = jnp.zeros_like(l_sc)
        acc_sc[...] = jnp.zeros_like(acc_sc)

    tn = x_ref.shape[1]
    _stage_tile(x_ref, wfc_ref, bfc_ref, watt_ref, batt_ref, wsc_ref, bsc_ref,
                m_sc, l_sc, acc_sc, token_offset=n_id * tn, n_valid=n_valid)

    @pl.when(n_id == pl.num_programs(1) - 1)
    def _():
        m = acc_sc[...] / l_sc[...] + m12_ref[0]             # [1, Dout]
        logits = jnp.dot(m, wcls_ref[...],
                         preferred_element_type=jnp.float32) + bcls_ref[...]
        logits_ref[0] = logits.astype(logits_ref.dtype)
        z = logits - jnp.max(logits, axis=-1, keepdims=True)
        e = jnp.exp(z)
        prob_ref[0] = (e / jnp.sum(e, axis=-1, keepdims=True)).astype(prob_ref.dtype)


# -----------------------------------------------------------------------------
# pallas_call wrappers
# -----------------------------------------------------------------------------
def stage_forward(x, fc_w, fc_b, ga, aux_ga, *, tile_n=None,
                  compute_dtype=jnp.bfloat16, token_splits=1):
    """One magnification level.  x: [B, N, Din] ->
       (M: [B, 1, Dout] f32, raw aux attention scores: [B, N] f32).

    token_splits=2 adds a leading parallel grid axis over token chunks so both
    v7x TensorCores get work when B == 1 (per-chunk partials, LSE-merged here).
    """
    B, N, Din = x.shape
    Dout = fc_w.shape[1]
    C = token_splits
    watt, batt, wsc, bsc = _pack_attention(ga, aux_ga, compute_dtype)
    att_w = watt.shape[1]
    tn, n_pad, tpc, vmem_limit = _plan_stage(N, Din, Dout, att_w, wsc.shape[0],
                                             compute_dtype, tile_n, C)
    if n_pad != N:
        x = jnp.pad(x, ((0, 0), (0, n_pad - N), (0, 0)))

    dbytes = jnp.dtype(compute_dtype).itemsize
    cost = pl.CostEstimate(
        flops=int(2 * B * n_pad * (Din * Dout + Dout * att_w
                                   + (att_w // 2) * wsc.shape[0] + Dout)),
        transcendentals=int(B * n_pad * (att_w + 1)),
        bytes_accessed=int(B * n_pad * (Din * dbytes + 4)
                           + (watt.size + fc_w.size) * dbytes + B * Dout * 12),
    )

    kernel = functools.partial(_stage_aux_kernel, tiles_per_core=tpc, n_valid=N)
    aux, m_p, l_p, acc_p = pl.pallas_call(
        kernel,
        grid=(B, C, tpc),
        in_specs=[
            pl.BlockSpec((1, tn, Din), lambda b, c, n, _t=tpc: (b, c * _t + n, 0)),
            _const_spec((Din, Dout)), _const_spec((1, Dout)),
            _const_spec(watt.shape), _const_spec(batt.shape),
            _const_spec(wsc.shape), _const_spec(bsc.shape),
        ],
        out_specs=(
            pl.BlockSpec((1, 1, tn), lambda b, c, n, _t=tpc: (b, 0, c * _t + n)),
            pl.BlockSpec((1, 1, 1, 1), lambda b, c, n: (b, c, 0, 0)),
            pl.BlockSpec((1, 1, 1, 1), lambda b, c, n: (b, c, 0, 0)),
            pl.BlockSpec((1, 1, 1, Dout), lambda b, c, n: (b, c, 0, 0)),
        ),
        out_shape=(
            jax.ShapeDtypeStruct((B, 1, n_pad), jnp.float32),
            jax.ShapeDtypeStruct((B, C, 1, 1), jnp.float32),
            jax.ShapeDtypeStruct((B, C, 1, 1), jnp.float32),
            jax.ShapeDtypeStruct((B, C, 1, Dout), jnp.float32),
        ),
        scratch_shapes=[pltpu.VMEM((1, 1), jnp.float32),
                        pltpu.VMEM((1, 1), jnp.float32),
                        pltpu.VMEM((1, Dout), jnp.float32)],
        compiler_params=pltpu.CompilerParams(
            dimension_semantics=("parallel", "parallel", "arbitrary"),
            vmem_limit_bytes=vmem_limit),
        cost_estimate=cost,
    )(x.astype(compute_dtype), fc_w.astype(compute_dtype),
      fc_b.astype(jnp.float32), watt, batt, wsc, bsc)

    # merge the per-chunk online-softmax partials (log-sum-exp combine).
    # fully padded chunks carry m = -1e30, l = 0 -> weight underflows to 0.
    m_g = jnp.max(m_p, axis=1, keepdims=True)
    w = jnp.exp(m_p - m_g)
    M = jnp.sum(w * acc_p, axis=1) / jnp.sum(w * l_p, axis=1)     # [B, 1, Dout]
    return M, aux[:, 0, :N]


def final_stage_forward(x, fc_w, fc_b, ga, m12, cls_w, cls_b, *, tile_n=None,
                        compute_dtype=jnp.bfloat16):
    """High-mag stage + bag sum + classifier + softmax.  Returns (logits, probs).
    (This stage only sees k_sample * zoom_ratio patches, so no token split.)"""
    B, N, Din = x.shape
    Dout = fc_w.shape[1]
    n_cls = cls_w.shape[1]
    watt, batt, wsc, bsc = _pack_attention(ga, None, compute_dtype)
    att_w = watt.shape[1]
    tn, n_pad, tpc, vmem_limit = _plan_stage(N, Din, Dout, att_w, 1,
                                             compute_dtype, tile_n, 1)
    if n_pad != N:
        x = jnp.pad(x, ((0, 0), (0, n_pad - N), (0, 0)))

    dbytes = jnp.dtype(compute_dtype).itemsize
    cost = pl.CostEstimate(
        flops=int(2 * B * n_pad * (Din * Dout + Dout * att_w + att_w // 2 + Dout)
                  + 2 * B * Dout * n_cls),
        transcendentals=int(B * n_pad * (att_w + 1) + B * n_cls),
        bytes_accessed=int(B * n_pad * Din * dbytes
                           + (watt.size + fc_w.size) * dbytes + B * (Dout + n_cls) * 8),
    )

    kernel = functools.partial(_final_stage_kernel, n_valid=N)
    logits, probs = pl.pallas_call(
        kernel,
        grid=(B, tpc),
        in_specs=[
            pl.BlockSpec((1, tn, Din), lambda b, n: (b, n, 0)),
            _const_spec((Din, Dout)), _const_spec((1, Dout)),
            _const_spec(watt.shape), _const_spec(batt.shape),
            _const_spec(wsc.shape), _const_spec(bsc.shape),
            pl.BlockSpec((1, 1, Dout), lambda b, n: (b, 0, 0)),
            _const_spec(cls_w.shape), _const_spec(cls_b.shape),
        ],
        out_specs=(pl.BlockSpec((1, 1, n_cls), lambda b, n: (b, 0, 0)),
                   pl.BlockSpec((1, 1, n_cls), lambda b, n: (b, 0, 0))),
        out_shape=(jax.ShapeDtypeStruct((B, 1, n_cls), jnp.float32),
                   jax.ShapeDtypeStruct((B, 1, n_cls), jnp.float32)),
        scratch_shapes=[pltpu.VMEM((1, 1), jnp.float32),
                        pltpu.VMEM((1, 1), jnp.float32),
                        pltpu.VMEM((1, Dout), jnp.float32)],
        compiler_params=pltpu.CompilerParams(
            dimension_semantics=("parallel", "arbitrary"),
            vmem_limit_bytes=vmem_limit),
        cost_estimate=cost,
    )(x.astype(compute_dtype), fc_w.astype(compute_dtype), fc_b.astype(jnp.float32),
      watt, batt, wsc, bsc, m12.astype(jnp.float32),
      cls_w.astype(jnp.float32), cls_b.astype(jnp.float32))
    return logits[:, 0, :], probs[:, 0, :]


# -----------------------------------------------------------------------------
# Plain-JAX glue: top-k selection + block gather (== einsum with kron(one_hot, eye))
# -----------------------------------------------------------------------------
def select_blocks(x, idx, r):
    """x: [B, N, D], idx: [B, k] block indices -> [B, k*r, D]."""
    B = x.shape[0]
    rows = idx[:, :, None] * r + jnp.arange(r)[None, None, :]
    rows = rows.reshape(B, -1)
    return jnp.take_along_axis(x, rows[:, :, None], axis=1)


def topk_sorted_indices(scores, k):
    _, idx = jax.lax.top_k(scores, k)
    return jnp.sort(idx, axis=-1)


# -----------------------------------------------------------------------------
# ZoomMIL forward (eval mode)
# -----------------------------------------------------------------------------
def zoommil_forward(params, x1, x2, x3, k_sample, *, tile_n=None,
                    compute_dtype=jnp.bfloat16, low_mag_token_splits=1):
    N1, N2, N3 = x1.shape[1], x2.shape[1], x3.shape[1]
    kw = dict(tile_n=tile_n, compute_dtype=compute_dtype)

    # ---- low magnification (the only stage that sees the full bag) ----
    M1, s1 = stage_forward(x1, params['fc_low_w'], params['fc_low_b'],
                           params['ga_low'], params['aux_ga_low'],
                           token_splits=low_mag_token_splits, **kw)
    # softmax before top-k is monotonic -> skipped; top-k on raw aux scores.
    idx1 = topk_sorted_indices(s1, min(N1, k_sample))
    x2s = select_blocks(x2, idx1, N2 // N1)
    x3s = select_blocks(x3, idx1, N3 // N1)

    # ---- mid magnification (k_sample * ratio patches only) ----
    M2, s2 = stage_forward(x2s, params['fc_mid_w'], params['fc_mid_b'],
                           params['ga_mid'], params['aux_ga_mid'], **kw)
    idx2 = topk_sorted_indices(s2, min(x2s.shape[1], k_sample))
    x3s = select_blocks(x3s, idx2, N3 // N2)

    # ---- high magnification (no aux) fused with bag sum + classify head ----
    logits, Y_prob = final_stage_forward(
        x3s, params['fc_high_w'], params['fc_high_b'], params['ga_high'],
        M1 + M2, params['cls_w'], params['cls_b'], **kw)
    Y_hat = jnp.argmax(logits, axis=-1)[:, None]
    return logits, Y_hat, Y_prob


# -----------------------------------------------------------------------------
# Deterministic parameter init + pure-JAX reference for verification
# -----------------------------------------------------------------------------
def make_linear(key, din, dout, scale=0.05):
    kw, kb = jax.random.split(key)
    w = scale * jax.random.normal(kw, (din, dout), jnp.float32)
    b = scale * jax.random.normal(kb, (1, dout), jnp.float32)
    return w, b


def make_ga(key, L, D):
    ka, kb, kc = jax.random.split(key, 3)
    wa, ba = make_linear(ka, L, D)
    wb, bb = make_linear(kb, L, D)
    wc, bc = make_linear(kc, D, 1)
    return dict(wa=wa, ba=ba, wb=wb, bb=bb, wc=wc, bc=bc)


def make_params(key, in_feat, hidden, out_feat, n_cls):
    ks = jax.random.split(key, 10)
    p = {}
    p['fc_low_w'], p['fc_low_b'] = make_linear(ks[0], in_feat, out_feat)
    p['fc_mid_w'], p['fc_mid_b'] = make_linear(ks[1], in_feat, out_feat)
    p['fc_high_w'], p['fc_high_b'] = make_linear(ks[2], in_feat, out_feat)
    p['ga_low'] = make_ga(ks[3], out_feat, hidden)
    p['ga_mid'] = make_ga(ks[4], out_feat, hidden)
    p['ga_high'] = make_ga(ks[5], out_feat, hidden)
    p['aux_ga_low'] = make_ga(ks[6], out_feat, hidden)
    p['aux_ga_mid'] = make_ga(ks[7], out_feat, hidden)
    p['cls_w'], p['cls_b'] = make_linear(ks[8], out_feat, n_cls)
    return p


def _ga_ref(x, p):
    a = jnp.tanh(x @ p['wa'] + p['ba'])
    b = jax.nn.sigmoid(x @ p['wb'] + p['bb'])
    return (a * b) @ p['wc'] + p['bc']


def _stage_ref(x, w, b, ga, aux_ga=None):
    h = jnp.maximum(x @ w + b, 0.0)
    A = jax.nn.softmax(jnp.swapaxes(_ga_ref(h, ga), 1, 2), axis=-1)   # [B,1,N]
    M = A @ h
    s_aux = None if aux_ga is None else _ga_ref(h, aux_ga)
    return M, s_aux


def zoommil_ref(params, x1, x2, x3, k_sample):
    N1, N2, N3 = x1.shape[1], x2.shape[1], x3.shape[1]
    M1, s1 = _stage_ref(x1, params['fc_low_w'], params['fc_low_b'],
                        params['ga_low'], params['aux_ga_low'])
    idx1 = topk_sorted_indices(jax.nn.softmax(s1[..., 0], -1), min(N1, k_sample))
    x2s = select_blocks(x2, idx1, N2 // N1)
    x3s = select_blocks(x3, idx1, N3 // N1)
    M2, s2 = _stage_ref(x2s, params['fc_mid_w'], params['fc_mid_b'],
                        params['ga_mid'], params['aux_ga_mid'])
    idx2 = topk_sorted_indices(jax.nn.softmax(s2[..., 0], -1),
                               min(x2s.shape[1], k_sample))
    x3s = select_blocks(x3s, idx2, N3 // N2)
    M3, _ = _stage_ref(x3s, params['fc_high_w'], params['fc_high_b'],
                       params['ga_high'])
    M = (M1 + M2 + M3)[:, 0, :]
    logits = M @ params['cls_w'] + params['cls_b']
    return logits, jnp.argmax(logits, -1)[:, None], jax.nn.softmax(logits, -1)


# -----------------------------------------------------------------------------
if __name__ == "__main__":
    key = jax.random.PRNGKey(0)

    B = 2
    N1, N2, N3 = 160, 640, 2560          # 4x / 4x magnification ratios
    in_feat, hidden, out_feat = 64, 32, 64
    n_cls, k_sample = 3, 12

    k_p, k1, k2, k3 = jax.random.split(key, 4)
    params = make_params(k_p, in_feat, hidden, out_feat, n_cls)
    x1 = jax.random.normal(k1, (B, N1, in_feat), jnp.float32)
    x2 = jax.random.normal(k2, (B, N2, in_feat), jnp.float32)
    x3 = jax.random.normal(k3, (B, N3, in_feat), jnp.float32)

    with jax.default_matmul_precision("highest"):
        ref_logits, ref_Y_hat, ref_Y_prob = zoommil_ref(params, x1, x2, x3, k_sample)

    # 1) f32, small token tile -> multi-tile online softmax + tail masking
    logits, Y_hat, Y_prob = zoommil_forward(params, x1, x2, x3, k_sample,
                                            tile_n=128, compute_dtype=jnp.float32)
    jax.block_until_ready((logits, Y_hat, Y_prob))
    assert logits.shape == (B, n_cls) and Y_hat.shape == (B, 1) and Y_prob.shape == (B, n_cls)
    assert jnp.allclose(logits, ref_logits, atol=3e-3, rtol=3e-3)
    assert jnp.allclose(Y_prob, ref_Y_prob, atol=3e-3, rtol=3e-3)
    assert jnp.all(Y_hat == ref_Y_hat)

    # 2) f32 + 2-way token split of the low-mag stage (v7x dual-TensorCore path)
    logits2, Y_hat2, Y_prob2 = zoommil_forward(params, x1, x2, x3, k_sample,
                                               tile_n=128, compute_dtype=jnp.float32,
                                               low_mag_token_splits=2)
    jax.block_until_ready((logits2, Y_hat2, Y_prob2))
    assert jnp.allclose(logits2, ref_logits, atol=3e-3, rtol=3e-3)
    assert jnp.all(Y_hat2 == ref_Y_hat)

    # 2b) standalone stage with a fully padded chunk (online-softmax NaN guard)
    x_small = x1[:, :40, :]
    M_s, s_s = stage_forward(x_small, params['fc_low_w'], params['fc_low_b'],
                             params['ga_low'], params['aux_ga_low'],
                             tile_n=128, compute_dtype=jnp.float32, token_splits=2)
    with jax.default_matmul_precision("highest"):
        M_ref, s_aux_ref = _stage_ref(x_small, params['fc_low_w'], params['fc_low_b'],
                                      params['ga_low'], params['aux_ga_low'])
    jax.block_until_ready((M_s, s_s))
    assert jnp.all(jnp.isfinite(M_s)) and jnp.all(jnp.isfinite(s_s))
    assert jnp.allclose(M_s, M_ref, atol=3e-3, rtol=3e-3)
    assert jnp.allclose(s_s, s_aux_ref[..., 0], atol=3e-3, rtol=3e-3)

    # 3) defaults: bf16 matmul operands + bf16 gates, auto tile / VMEM budget
    logits3, Y_hat3, Y_prob3 = zoommil_forward(params, x1, x2, x3, k_sample)
    jax.block_until_ready((logits3, Y_hat3, Y_prob3))
    assert logits3.shape == (B, n_cls) and jnp.all(jnp.isfinite(logits3))
    assert jnp.allclose(jnp.sum(Y_prob3, axis=-1), 1.0, atol=1e-2)
    # loose check only: bf16-influenced aux scores may tie-break top-k differently
    assert jnp.allclose(logits3, ref_logits, atol=0.5, rtol=0.5)

    print("KERNEL_OK")
</pallas_src>

<mosaic_0001>
module attributes {stable_mosaic.version = 11 : i64} {
  func.func @_k(%arg0: i32, %arg1: i32, %arg2: memref<8x128xf32, #tpu.memory_space<vmem>>, %arg3: memref<8x128xf32, #tpu.memory_space<vmem>>, %arg4: memref<8x128xf32, #tpu.memory_space<vmem>>, %arg5: memref<8x128xf32, #tpu.memory_space<vmem>>) attributes {dimension_semantics = [#tpu.dimension_semantics<parallel>, #tpu.dimension_semantics<arbitrary>], iteration_bounds = array<i64: 2, 2>, scalar_prefetch = 0 : i64, scratch_operands = 1 : i64, tpu.core_type = #tpu.core_type<tc>, window_params = [{pipeline_mode = #tpu.pipeline_mode<synchronous>, transform_indices = @transform_0, window_bounds = array<i64: 8, 128>}, {transform_indices = @transform_1, window_bounds = array<i64: 8, 128>}, {transform_indices = @transform_2, window_bounds = array<i64: 8, 128>}]} {
    %c0_i32 = arith.constant 0 : i32
    %0 = arith.cmpi eq, %arg1, %c0_i32 : i32
    %1 = arith.extui %0 : i1 to i32
    %c0_i32_0 = arith.constant 0 : i32
    %2 = arith.cmpi ne, %1, %c0_i32_0 : i32
    scf.if %2 {
      %cst = arith.constant 0.000000e+00 : f32
      %11 = vector.broadcast %cst : f32 to vector<8x128xf32>
      %c0_12 = arith.constant 0 : index
      %c0_13 = arith.constant 0 : index
      %12 = vector.load %arg5[%c0_12, %c0_13] : memref<8x128xf32, #tpu.memory_space<vmem>>, vector<8x128xf32>
      tpu.vector_store %arg5[%c0_12, %c0_13], %11 {strides = array<i32>} : memref<8x128xf32, #tpu.memory_space<vmem>>, vector<8x128xf32>,
    } else {
    }
    %c0 = arith.constant 0 : index
    %c0_1 = arith.constant 0 : index
    %3 = vector.load %arg5[%c0, %c0_1] : memref<8x128xf32, #tpu.memory_space<vmem>>, vector<8x128xf32>
    %c0_2 = arith.constant 0 : index
    %c0_3 = arith.constant 0 : index
    %4 = vector.load %arg3[%c0_2, %c0_3] : memref<8x128xf32, #tpu.memory_space<vmem>>, vector<8x128xf32>
    %c0_4 = arith.constant 0 : index
    %c0_5 = arith.constant 0 : index
    %5 = vector.load %arg2[%c0_4, %c0_5] : memref<8x128xf32, #tpu.memory_space<vmem>>, vector<8x128xf32>
    %6 = arith.addf %4, %5 : vector<8x128xf32>
    %7 = arith.addf %3, %6 : vector<8x128xf32>
    %c0_6 = arith.constant 0 : index
    %c0_7 = arith.constant 0 : index
    %8 = vector.load %arg5[%c0_6, %c0_7] : memref<8x128xf32, #tpu.memory_space<vmem>>, vector<8x128xf32>
    tpu.vector_store %arg5[%c0_6, %c0_7], %7 {strides = array<i32>} : memref<8x128xf32, #tpu.memory_space<vmem>>, vector<8x128xf32>,
    %c0_8 = arith.constant 0 : index
    %c0_9 = arith.constant 0 : index
    %9 = vector.load %arg5[%c0_8, %c0_9] : memref<8x128xf32, #tpu.memory_space<vmem>>, vector<8x128xf32>
    %c0_10 = arith.constant 0 : index
    %c0_11 = arith.constant 0 : index
    %10 = vector.load %arg4[%c0_10, %c0_11] : memref<8x128xf32, #tpu.memory_space<vmem>>, vector<8x128xf32>
    tpu.vector_store %arg4[%c0_10, %c0_11], %9 {strides = array<i32>} : memref<8x128xf32, #tpu.memory_space<vmem>>, vector<8x128xf32>,
    return
  }
  func.func @transform_0(%arg0: i32, %arg1: i32) -> (i32, i32) {
    %c0_i32 = arith.constant 0 : i32
    %c0_i32_0 = arith.constant 0 : i32
    %c0_i32_1 = arith.constant 0 : i32
    return %c0_i32, %c0_i32_0 : i32, i32
  }
  func.func @transform_1(%arg0: i32, %arg1: i32) -> (i32, i32) {
    %c0_i32 = arith.constant 0 : i32
    return %arg0, %arg1 : i32, i32
  }
  func.func @transform_2(%arg0: i32, %arg1: i32) -> (i32, i32) {
    %c0_i32 = arith.constant 0 : i32
    %c0_i32_0 = arith.constant 0 : i32
    return %arg0, %c0_i32 : i32, i32
  }
}

module attributes {stable_mosaic.version = 11 : i64} {
  func.func @_stage_aux_kernel(%arg0: i32, %arg1: i32, %arg2: i32, %arg3: memref<1x128x64xf32, #tpu.memory_space<vmem>>, %arg4: memref<64x64xf32, #tpu.memory_space<vmem>>, %arg5: memref<1x64xf32, #tpu.memory_space<vmem>>, %arg6: memref<64x256xf32, #tpu.memory_space<vmem>>, %arg7: memref<1x256xf32, #tpu.memory_space<vmem>>, %arg8: memref<2x128xf32, #tpu.memory_space<vmem>>, %arg9: memref<2x1xf32, #tpu.memory_space<vmem>>, %arg10: memref<1x1x128xf32, #tpu.memory_space<vmem>>, %arg11: memref<1x1x1x1xf32, #tpu.memory_space<vmem>>, %arg12: memref<1x1x1x1xf32, #tpu.memory_space<vmem>>, %arg13: memref<1x1x1x64xf32, #tpu.memory_space<vmem>>, %arg14: memref<1x1xf32, #tpu.memory_space<vmem>>, %arg15: memref<1x1xf32, #tpu.memory_space<vmem>>, %arg16: memref<1x64xf32, #tpu.memory_space<vmem>>) attributes {dimension_semantics = [#tpu.dimension_semantics<parallel>, #tpu.dimension_semantics<parallel>, #tpu.dimension_semantics<arbitrary>], iteration_bounds = array<i64: 2, 1, 2>, scalar_prefetch = 0 : i64, scratch_operands = 3 : i64, tpu.core_type = #tpu.core_type<tc>, window_params = [{transform_indices = @transform_0, window_bounds = array<i64: 1, 128, 64>}, {pipeline_mode = #tpu.pipeline_mode<synchronous>, transform_indices = @transform_1, window_bounds = array<i64: 64, 64>}, {pipeline_mode = #tpu.pipeline_mode<synchronous>, transform_indices = @transform_2, window_bounds = array<i64: 1, 64>}, {pipeline_mode = #tpu.pipeline_mode<synchronous>, transform_indices = @transform_3, window_bounds = array<i64: 64, 256>}, {pipeline_mode = #tpu.pipeline_mode<synchronous>, transform_indices = @transform_4, window_bounds = array<i64: 1, 256>}, {pipeline_mode = #tpu.pipeline_mode<synchronous>, transform_indices = @transform_5, window_bounds = array<i64: 2, 128>}, {pipeline_mode = #tpu.pipeline_mode<synchronous>, transform_indices = @transform_6, window_bounds = array<i64: 2, 1>}, {transform_indices = @transform_7, window_bounds = array<i64: 1, 1, 128>}, {transform_indices = @transform_8, window_bounds = array<i64: 1, 1, 1, 1>}, {transform_indices = @transform_9, window_bounds = array<i64: 1, 1, 1, 1>}, {transform_indices = @transform_10, window_bounds = array<i64: 1, 1, 1, 64>}]} {
    %c0_i32 = arith.constant 0 : i32
    %0 = arith.cmpi eq, %arg2, %c0_i32 : i32
    %1 = arith.extui %0 : i1 to i32
    %c0_i32_0 = arith.constant 0 : i32
    %2 = arith.cmpi ne, %1, %c0_i32_0 : i32
    scf.if %2 {
      %cst_39 = arith.constant -1.000000e+30 : f32
      %72 = vector.broadcast %cst_39 : f32 to vector<1x1xf32>
      %c0_40 = arith.constant 0 : index
      %c0_41 = arith.constant 0 : index
      %73 = vector.load %arg14[%c0_40, %c0_41] : memref<1x1xf32, #tpu.memory_space<vmem>>, vector<1x1xf32>
      tpu.vector_store %arg14[%c0_40, %c0_41], %72 {strides = array<i32>} : memref<1x1xf32, #tpu.memory_space<vmem>>, vector<1x1xf32>,
      %cst_42 = arith.constant 0.000000e+00 : f32
      %74 = vector.broadcast %cst_42 : f32 to vector<1x1xf32>
      %c0_43 = arith.constant 0 : index
      %c0_44 = arith.constant 0 : index
      %75 = vector.load %arg15[%c0_43, %c0_44] : memref<1x1xf32, #tpu.memory_space<vmem>>, vector<1x1xf32>
      tpu.vector_store %arg15[%c0_43, %c0_44], %74 {strides = array<i32>} : memref<1x1xf32, #tpu.memory_space<vmem>>, vector<1x1xf32>,
      %cst_45 = arith.constant 0.000000e+00 : f32
      %76 = vector.broadcast %cst_45 : f32 to vector<1x64xf32>
      %c0_46 = arith.constant 0 : index
      %c0_47 = arith.constant 0 : index
      %77 = vector.load %arg16[%c0_46, %c0_47] : memref<1x64xf32, #tpu.memory_space<vmem>>, vector<1x64xf32>
      tpu.vector_store %arg16[%c0_46, %c0_47], %76 {strides = array<i32>} : memref<1x64xf32, #tpu.memory_space<vmem>>, vector<1x64xf32>,
    } else {
    }
    %c2_i32 = arith.constant 2 : i32
    %3 = arith.muli %arg1, %c2_i32 : i32
    %4 = arith.addi %3, %arg2 : i32
    %c128_i32 = arith.constant 128 : i32
    %5 = arith.muli %4, %c128_i32 : i32
    %c0 = arith.constant 0 : index
    %c0_1 = arith.constant 0 : index
    %c0_2 = arith.constant 0 : index
    %6 = vector.load %arg3[%c0, %c0_1, %c0_2] : memref<1x128x64xf32, #tpu.memory_space<vmem>>, vector<1x128x64xf32>
    %7 = vector.shape_cast %6 : vector<1x128x64xf32> to vector<128x64xf32>
    %8 = tpu.iota {dimensions = array<i32: 1>} : vector<1x128xi32>
    %9 = vector.broadcast %5 : i32 to vector<1x128xi32>
    %10 = arith.addi %8, %9 : vector<1x128xi32>
    %c160_i32 = arith.constant 160 : i32
    %11 = vector.broadcast %c160_i32 : i32 to vector<1x128xi32>
    %12 = arith.cmpi slt, %10, %11 : vector<1x128xi32>
    %c0_3 = arith.constant 0 : index
    %c0_4 = arith.constant 0 : index
    %13 = vector.load %arg4[%c0_3, %c0_4] : memref<64x64xf32, #tpu.memory_space<vmem>>, vector<64x64xf32>
    %cst = arith.constant dense<0.000000e+00> : vector<128x64xf32>
    %14 = tpu.matmul %7, %13, %cst {dimension_numbers = #tpu.dot_dimension_numbers<[1], [0], [0], [1], [0, 0, 1, 1], [], []>} : vector<128x64xf32>, vector<64x64xf32>, vector<128x64xf32> -> vector<128x64xf32>
    %c0_5 = arith.constant 0 : index
    %c0_6 = arith.constant 0 : index
    %15 = vector.load %arg5[%c0_5, %c0_6] : memref<1x64xf32, #tpu.memory_space<vmem>>, vector<1x64xf32>
    %16 = vector.broadcast %15 : vector<1x64xf32> to vector<128x64xf32>
    %17 = arith.addf %14, %16 : vector<128x64xf32>
    %cst_7 = arith.constant 0.000000e+00 : f32
    %18 = vector.broadcast %cst_7 : f32 to vector<128x64xf32>
    %19 = arith.maximumf %17, %18 : vector<128x64xf32>
    %c0_8 = arith.constant 0 : index
    %c0_9 = arith.constant 0 : index
    %20 = vector.load %arg6[%c0_8, %c0_9] : memref<64x256xf32, #tpu.memory_space<vmem>>, vector<64x256xf32>
    %cst_10 = arith.constant dense<0.000000e+00> : vector<128x256xf32>
    %21 = tpu.matmul %19, %20, %cst_10 {dimension_numbers = #tpu.dot_dimension_numbers<[1], [0], [0], [1], [0, 0, 1, 1], [], []>} : vector<128x64xf32>, vector<64x256xf32>, vector<128x256xf32> -> vector<128x256xf32>
    %c0_11 = arith.constant 0 : index
    %c0_12 = arith.constant 0 : index
    %22 = vector.load %arg7[%c0_11, %c0_12] : memref<1x256xf32, #tpu.memory_space<vmem>>, vector<1x256xf32>
    %23 = vector.broadcast %22 : vector<1x256xf32> to vector<128x256xf32>
    %24 = arith.addf %21, %23 : vector<128x256xf32>
    %25 = vector.extract_strided_slice %24 {offsets = [0, 0], sizes = [128, 128], strides = [1, 1]} : vector<128x256xf32> to vector<128x128xf32>
    %26 = math.tanh %25 : vector<128x128xf32>
    %27 = vector.extract_strided_slice %24 {offsets = [0, 128], sizes = [128, 128], strides = [1, 1]} : vector<128x256xf32> to vector<128x128xf32>
    %28 = arith.negf %27 : vector<128x128xf32>
    %29 = math.exp %28 : vector<128x128xf32>
    %cst_13 = arith.constant 1.000000e+00 : f32
    %30 = vector.broadcast %cst_13 : f32 to vector<128x128xf32>
    %31 = arith.addf %30, %29 : vector<128x128xf32>
    %32 = arith.divf %30, %31 : vector<128x128xf32>
    %33 = arith.mulf %26, %32 : vector<128x128xf32>
    %c0_14 = arith.constant 0 : index
    %c0_15 = arith.constant 0 : index
    %34 = vector.load %arg8[%c0_14, %c0_15] : memref<2x128xf32, #tpu.memory_space<vmem>>, vector<2x128xf32>
    %cst_16 = arith.constant dense<0.000000e+00> : vector<2x128xf32>
    %35 = tpu.matmul %34, %33, %cst_16 {dimension_numbers = #tpu.dot_dimension_numbers<[1], [1], [0], [0], [0, 0, 1, 0], [], []>} : vector<2x128xf32>, vector<128x128xf32>, vector<2x128xf32> -> vector<2x128xf32>
    %c0_17 = arith.constant 0 : index
    %c0_18 = arith.constant 0 : index
    %36 = vector.load %arg9[%c0_17, %c0_18] : memref<2x1xf32, #tpu.memory_space<vmem>>, vector<2x1xf32>
    %37 = vector.broadcast %36 : vector<2x1xf32> to vector<2x128xf32>
    %38 = arith.addf %35, %37 : vector<2x128xf32>
    %cst_19 = arith.constant 0xFF800000 : f32
    %39 = vector.shape_cast %12 : vector<1x128xi1> to vector<1x128xi1>
    %40 = vector.broadcast %39 : vector<1x128xi1> to vector<2x128xi1>
    %41 = vector.broadcast %cst_19 : f32 to vector<2x128xf32>
    %42 = arith.select %40, %38, %41 : vector<2x128xi1>, vector<2x128xf32>
    %43 = vector.extract_strided_slice %42 {offsets = [0, 0], sizes = [1, 128], strides = [1, 1]} : vector<2x128xf32> to vector<1x128xf32>
    %c0_20 = arith.constant 0 : index
    %c0_21 = arith.constant 0 : index
    %44 = vector.load %arg14[%c0_20, %c0_21] : memref<1x1xf32, #tpu.memory_space<vmem>>, vector<1x1xf32>
    %cst_22 = arith.constant dense<0xFF800000> : vector<1xf32>
    %45 = vector.multi_reduction <maximumf>, %43, %cst_22 [1] : vector<1x128xf32> to vector<1xf32>
    %46 = vector.shape_cast %45 : vector<1xf32> to vector<1x1xf32>
    %47 = arith.maximumf %44, %46 : vector<1x1xf32>
    %48 = arith.subf %44, %47 : vector<1x1xf32>
    %49 = math.exp %48 : vector<1x1xf32>
    %50 = vector.broadcast %47 : vector<1x1xf32> to vector<1x128xf32>
    %51 = arith.subf %43, %50 : vector<1x128xf32>
    %52 = math.exp %51 : vector<1x128xf32>
    %c0_23 = arith.constant 0 : index
    %c0_24 = arith.constant 0 : index
    %53 = vector.load %arg15[%c0_23, %c0_24] : memref<1x1xf32, #tpu.memory_space<vmem>>, vector<1x1xf32>
    %54 = arith.mulf %49, %53 : vector<1x1xf32>
    %cst_25 = arith.constant dense<0.000000e+00> : vector<1xf32>
    %55 = vector.multi_reduction <add>, %52, %cst_25 [1] : vector<1x128xf32> to vector<1xf32>
    %56 = vector.shape_cast %55 : vector<1xf32> to vector<1x1xf32>
    %57 = arith.addf %54, %56 : vector<1x1xf32>
    %c0_26 = arith.constant 0 : index
    %c0_27 = arith.constant 0 : index
    %58 = vector.load %arg15[%c0_26, %c0_27] : memref<1x1xf32, #tpu.memory_space<vmem>>, vector<1x1xf32>
    tpu.vector_store %arg15[%c0_26, %c0_27], %57 {strides = array<i32>} : memref<1x1xf32, #tpu.memory_space<vmem>>, vector<1x1xf32>,
    %c0_28 = arith.constant 0 : index
    %c0_29 = arith.constant 0 : index
    %59 = vector.load %arg16[%c0_28, %c0_29] : memref<1x64xf32, #tpu.memory_space<vmem>>, vector<1x64xf32>
    %60 = vector.broadcast %49 : vector<1x1xf32> to vector<1x64xf32>
    %61 = arith.mulf %60, %59 : vector<1x64xf32>
    %cst_30 = arith.constant dense<0.000000e+00> : vector<1x64xf32>
    %62 = tpu.matmul %52, %19, %cst_30 {dimension_numbers = #tpu.dot_dimension_numbers<[1], [0], [0], [1], [0, 0, 1, 1], [], []>} : vector<1x128xf32>, vector<128x64xf32>, vector<1x64xf32> -> vector<1x64xf32>
    %63 = arith.addf %61, %62 : vector<1x64xf32>
    %c0_31 = arith.constant 0 : index
    %c0_32 = arith.constant 0 : index
    %64 = vector.load %arg16[%c0_31, %c0_32] : memref<1x64xf32, #tpu.memory_space<vmem>>, vector<1x64xf32>
    tpu.vector_store %arg16[%c0_31, %c0_32], %63 {strides = array<i32>} : memref<1x64xf32, #tpu.memory_space<vmem>>, vector<1x64xf32>,
    %c0_33 = arith.constant 0 : index
    %c0_34 = arith.constant 0 : index
    %65 = vector.load %arg14[%c0_33, %c0_34] : memref<1x1xf32, #tpu.memory_space<vmem>>, vector<1x1xf32>
    tpu.vector_store %arg14[%c0_33, %c0_34], %47 {strides = array<i32>} : memref<1x1xf32, #tpu.memory_space<vmem>>, vector<1x1xf32>,
    %66 = vector.extract_strided_slice %42 {offsets = [1, 0], sizes = [1, 128], strides = [1, 1]} : vector<2x128xf32> to vector<1x128xf32>
    %67 = vector.shape_cast %66 : vector<1x128xf32> to vector<1x1x128xf32>
    %c0_35 = arith.constant 0 : index
    %c0_36 = arith.constant 0 : index
    %c0_37 = arith.constant 0 : index
    %68 = vector.load %arg10[%c0_35, %c0_36, %c0_37] : memref<1x1x128xf32, #tpu.memory_space<vmem>>, vector<1x1x128xf32>
    tpu.vector_store %arg10[%c0_35, %c0_36, %c0_37], %67 {strides = array<i32>} : memref<1x1x128xf32, #tpu.memory_space<vmem>>, vector<1x1x128xf32>,
    %c1_i32 = arith.constant 1 : i32
    %69 = arith.cmpi eq, %arg2, %c1_i32 : i32
    %70 = arith.extui %69 : i1 to i32
    %c0_i32_38 = arith.constant 0 : i32
    %71 = arith.cmpi ne, %70, %c0_i32_38 : i32
    scf.if %71 {
      %c0_39 = arith.constant 0 : index
      %c0_40 = arith.constant 0 : index
      %72 = vector.load %arg14[%c0_39, %c0_40] : memref<1x1xf32, #tpu.memory_space<vmem>>, vector<1x1xf32>
      %73 = vector.shape_cast %72 : vector<1x1xf32> to vector<1x1x1x1xf32>
      %c0_41 = arith.constant 0 : index
      %c0_42 = arith.constant 0 : index
      %c0_43 = arith.constant 0 : index
      %c0_44 = arith.constant 0 : index
      %74 = vector.load %arg11[%c0_41, %c0_42, %c0_43, %c0_44] : memref<1x1x1x1xf32, #tpu.memory_space<vmem>>, vector<1x1x1x1xf32>
      tpu.vector_store %arg11[%c0_41, %c0_42, %c0_43, %c0_44], %73 {strides = array<i32>} : memref<1x1x1x1xf32, #tpu.memory_space<vmem>>, vector<1x1x1x1xf32>,
      %c0_45 = arith.constant 0 : index
      %c0_46 = arith.constant 0 : index
      %75 = vector.load %arg15[%c0_45, %c0_46] : memref<1x1xf32, #tpu.memory_space<vmem>>, vector<1x1xf32>
      %76 = vector.shape_cast %75 : vector<1x1xf32> to vector<1x1x1x1xf32>
      %c0_47 = arith.constant 0 : index
      %c0_48 = arith.constant 0 : index
      %c0_49 = arith.constant 0 : index
      %c0_50 = arith.constant 0 : index
      %77 = vector.load %arg12[%c0_47, %c0_48, %c0_49, %c0_50] : memref<1x1x1x1xf32, #tpu.memory_space<vmem>>, vector<1x1x1x1xf32>
      tpu.vector_store %arg12[%c0_47, %c0_48, %c0_49, %c0_50], %76 {strides = array<i32>} : memref<1x1x1x1xf32, #tpu.memory_space<vmem>>, vector<1x1x1x1xf32>,
      %c0_51 = arith.constant 0 : index
      %c0_52 = arith.constant 0 : index
      %78 = vector.load %arg16[%c0_51, %c0_52] : memref<1x64xf32, #tpu.memory_space<vmem>>, vector<1x64xf32>
      %79 = vector.shape_cast %78 : vector<1x64xf32> to vector<1x1x1x64xf32>
      %c0_53 = arith.constant 0 : index
      %c0_54 = arith.constant 0 : index
      %c0_55 = arith.constant 0 : index
      %c0_56 = arith.constant 0 : index
      %80 = vector.load %arg13[%c0_53, %c0_54, %c0_55, %c0_56] : memref<1x1x1x64xf32, #tpu.memory_space<vmem>>, vector<1x1x1x64xf32>
      tpu.vector_store %arg13[%c0_53, %c0_54, %c0_55, %c0_56], %79 {strides = array<i32>} : memref<1x1x1x64xf32, #tpu.memory_space<vmem>>, vector<1x1x1x64xf32>,
    } else {
    }
    return
  }
  func.func @transform_0(%arg0: i32, %arg1: i32, %arg2: i32) -> (i32, i32, i32) {
    %c2_i32 = arith.constant 2 : i32
    %0 = arith.muli %arg1, %c2_i32 : i32
    %1 = arith.addi %0, %arg2 : i32
    %c0_i32 = arith.constant 0 : i32
    %c0_i32_0 = arith.constant 0 : i32
    return %arg0, %1, %c0_i32 : i32, i32, i32
  }
  func.func @transform_1(%arg0: i32, %arg1: i32, %arg2: i32) -> (i32, i32) {
    %c0_i32 = arith.constant 0 : i32
    %c0_i32_0 = arith.constant 0 : i32
    %c0_i32_1 = arith.constant 0 : i32
    return %c0_i32, %c0_i32_0 : i32, i32
  }
  func.func @transform_2(%arg0: i32, %arg1: i32, %arg2: i32) -> (i32, i32) {
    %c0_i32 = arith.constant 0 : i32
    %c0_i32_0 = arith.constant 0 : i32
    %c0_i32_1 = arith.constant 0 : i32
    return %c0_i32, %c0_i32_0 : i32, i32
  }
  func.func @transform_3(%arg0: i32, %arg1: i32, %arg2: i32) -> (i32, i32) {
    %c0_i32 = arith.constant 0 : i32
    %c0_i32_0 = arith.constant 0 : i32
    %c0_i32_1 = arith.constant 0 : i32
    return %c0_i32, %c0_i32_0 : i32, i32
  }
  func.func @transform_4(%arg0: i32, %arg1: i32, %arg2: i32) -> (i32, i32) {
    %c0_i32 = arith.constant 0 : i32
    %c0_i32_0 = arith.constant 0 : i32
    %c0_i32_1 = arith.constant 0 : i32
    return %c0_i32, %c0_i32_0 : i32, i32
  }
  func.func @transform_5(%arg0: i32, %arg1: i32, %arg2: i32) -> (i32, i32) {
    %c0_i32 = arith.constant 0 : i32
    %c0_i32_0 = arith.constant 0 : i32
    %c0_i32_1 = arith.constant 0 : i32
    return %c0_i32, %c0_i32_0 : i32, i32
  }
  func.func @transform_6(%arg0: i32, %arg1: i32, %arg2: i32) -> (i32, i32) {
    %c0_i32 = arith.constant 0 : i32
    %c0_i32_0 = arith.constant 0 : i32
    %c0_i32_1 = arith.constant 0 : i32
    return %c0_i32, %c0_i32_0 : i32, i32
  }
  func.func @transform_7(%arg0: i32, %arg1: i32, %arg2: i32) -> (i32, i32, i32) {
    %c2_i32 = arith.constant 2 : i32
    %0 = arith.muli %arg1, %c2_i32 : i32
    %1 = arith.addi %0, %arg2 : i32
    %c0_i32 = arith.constant 0 : i32
    %c0_i32_0 = arith.constant 0 : i32
    return %arg0, %c0_i32, %1 : i32, i32, i32
  }
  func.func @transform_8(%arg0: i32, %arg1: i32, %arg2: i32) -> (i32, i32, i32, i32) {
    %c0_i32 = arith.constant 0 : i32
    %c0_i32_0 = arith.constant 0 : i32
    %c0_i32_1 = arith.constant 0 : i32
    return %arg0, %arg1, %c0_i32, %c0_i32_0 : i32, i32, i32, i32
  }
  func.func @transform_9(%arg0: i32, %arg1: i32, %arg2: i32) -> (i32, i32, i32, i32) {
    %c0_i32 = arith.constant 0 : i32
    %c0_i32_0 = arith.constant 0 : i32
    %c0_i32_1 = arith.constant 0 : i32
    return %arg0, %arg1, %c0_i32, %c0_i32_0 : i32, i32, i32, i32
  }
  func.func @transform_10(%arg0: i32, %arg1: i32, %arg2: i32) -> (i32, i32, i32, i32) {
    %c0_i32 = arith.constant 0 : i32
    %c0_i32_0 = arith.constant 0 : i32
    %c0_i32_1 = arith.constant 0 : i32
    return %arg0, %arg1, %c0_i32, %c0_i32_0 : i32, i32, i32, i32
  }
}

</mosaic_0001>

<bundles_post_ra>
// kernel: tpu_custom_call.1
= control target key start
LH: loop header
LB: loop body
LE: loop exit
PB: predicated region body
PF: predicated region fallthrough
CT: control target
= control target key end

     0   :  { %s844_s0 = inlined_call_operand.hbm [shape: f32[8,128], index: 0, kind: input, shape index: {}]   ;;  %s845_s1 = inlined_call_operand.hbm [shape: f32[16,256], index: 1, kind: input, shape index: {}]   ;;  %s846_s2 = inlined_call_operand.hbm [shape: f32[16,128], index: 2, kind: output, shape index: {}]  }
   0x1   :  { %853 = sst [smem:[#allocation17_spill]] %s844_s0 }
   0x2   :  { %854 = sst [smem:[#allocation18_spill]] %s846_s2 }
   0x3   :  { %7 = vsyncpa [#allocation4], 0 }
   0x4   :  { %8 = vsyncpa [#allocation7], 0 }
   0x5   :  { %10 = vsyncpa [#allocation7 + $0x1], 0 }
   0x6   :  { %11 = vsyncpa [#allocation5], 0 }
   0x7   :  { %13 = vsyncpa [#allocation5 + $0x1], 0  ;;  %s652_s9 = smov 0   ;;  %s654_s10 = smov 0  }
   0x8   :  { %s656_s11 = smov 0   ;;  %s658_s12 = smov 0  }
   0x9   :  { %s660_s13 = smov 0   ;;  %s662_s14 = smov 0  }
   0xa   :  { %s664_s15 = smov 0   ;;  %s666_s16 = smov 0  }
   0xb   :  { %s668_s17 = smov 0   ;;  %s670_s18 = smov 0  }
   0xc   :  { %s672_s19 = smov 0  }
   0xd LB: > { %855 = sst [smem:[#allocation12_spill]] %s593_s9  ;;  %s316_s20 = sadd.s32 4294967295, %s633_s19   ;;  %s633_s19 = sphi %s672_s19, %s19_s19   ;;  %s629_s18 = sphi %s670_s18, %s883_s18   ;;  %s625_s17 = sphi %s668_s17, %s882_s17   ;;  %s621_s16 = sphi %s666_s16, %s881_s16   ;;  %s617_s15 = sphi %s664_s15, %s880_s15   ;;  %s613_s14 = sphi %s662_s14, %s879_s14   ;;  %s609_s13 = sphi %s660_s13, %s878_s13   ;;  %s605_s12 = sphi %s658_s12, %s877_s12   ;;  %s601_s11 = sphi %s656_s11, %s876_s11   ;;  %s597_s10 = sphi %s654_s10, %s875_s10   ;;  %s593_s9 = sphi %s652_s9, %s874_s9  }
   0xe   : > { %856 = sst [smem:[#allocation13_spill]] %s621_s16  ;;  %s317_s21 = sadd.s32 4294967294, %s633_s19  }
   0xf   : > { %p74_p0 = scmp.ne.s32.totalorder %s609_s13, %s605_s12  ;;  %p708_p1 = scmp.eq.s32.totalorder %s316_s20, 0 }
  0x10   : > { %p97_p2 = scmp.ne.s32.totalorder %s601_s11, %s597_s10  ;;  %p98_p3 = scmp.eq.s32.totalorder %s316_s20, 3 }
  0x11   : > { %p716_p4 = por %p708_p1, %p74_p0  ;;  %p103_p5 = scmp.ne.s32.totalorder %s597_s10, %s593_s9 }
  0x12   : > { %p722_p6 = por %p98_p3, %p97_p2  ;;  %p104_p7 = scmp.eq.s32.totalorder %s317_s21, 3 }
  0x13   : > { %p318_p8 = scmp.ge.s32.totalorder %s633_s19, 1  ;;  %p111_p9 = scmp.lt.s32.totalorder %s633_s19, 5 }
  0x14   : > { %s859_s24 = scalar_select %p722_p6, 1, 0 }
  0x15   : > { %p728_p10 = por %p104_p7, %p103_p5  ;;  %p732_p11 = pnand %p318_p8, %p111_p9 }
  0x16   : > { %860 = sst [smem:[#allocation14_spill]] %s859_s24  ;;  %s635_s30 = smov [#allocation3]  }
  0x17   : > { %s861_s25 = scalar_select %p728_p10, 1, 0 }
  0x18   : > { %s864_s0 = sld [smem:[#allocation17_spill]]  ;;  %p341_p12 = pneg %p732_p11 }
  0x19   : > { %862 = sst [smem:[#allocation15_spill]] %s861_s25  ;;  %s125_s3 = sshll.u32 %s635_s30, 4  ;;  %s126_s3 = int_to_ptr.vmem [resolvable:$true] %s125_s3 }
  0x1a   : > { %p342_p13 = pnand %p341_p12, %p708_p1  ;;  %s28_s4 = sadd.s32 1, %s625_s17 }
  0x1b   : > { %s31_s5 = sadd.s32 1, %s629_s18  ;;  %p29_p0 = scmp.ge.s32.totalorder %s28_s4, 2 }
  0x1c   : > { %s61_s6 = sadd.s32 1, %s613_s14  ;;  %p68_p2 = scmp.ne.s32.totalorder %s613_s14, %s609_s13 }
  0x1d   : > { %p69_p3 = scmp.eq.s32.totalorder %s633_s19, 0  ;;  %s885_s4 = smov (%p29_p0, %s28_s4), 0 }
  0x1e   : > { %s123_s29 = sshll.u32 %s864_s0, 4  ;;  %865 = sst [smem:[#allocation16_spill]] %s885_s4  ;;  %s124_s29 = int_to_ptr.hbm [resolvable:$true] %s123_s29 }
  0x1f   : > { %344 = dma.hbm_to_vmem [thread:$0]  (!%p342_p13), %s124_s29, 128, %s126_s3, [#allocation4]  }
  0x20   : > { %s887_s5 = smov (!%p29_p0, %s31_s5), %s629_s18  ;;  %s57_s7 = ssub.s32 %s625_s17, %s885_s4 }
  0x21   : > { %p754_p5 = por %p69_p3, %p68_p2  ;;  %p33_p7 = scmp.ge.s32.totalorder %s887_s5, 2 }
  0x22   : > { %s87_s12 = sadd.s32 1, %s601_s11  ;;  %p354_p8 = scmp.lt.s32.totalorder %s633_s19, 4 }
  0x23   : > { %s136_s20 = sand.u32 1, %s613_s14   ;;  %s889_s5 = smov (%p33_p7, %s887_s5), 0 }
  0x24   : > { %s321_s21 = sshll.u32 %s136_s20, 3  ;;  %s56_s27 = ssub.s32 %s629_s18, %s889_s5 }
  0x25   : > { %s58_s28 = sor.u32 %s57_s7, %s56_s27  ;;  %p85_p9 = scmp.eq.s32.totalorder %s56_s27, 0 }
  0x26   : > { %p59_p12 = scmp.eq.s32.totalorder %s58_s28, 0  ;;  %s322_s29 = sshll.u32 %s629_s18, 1 }
  0x27   : > { %s767_s30 = scalar_select %p85_p9, %s601_s11, %s87_s12  }
  0x28   : > { %s770_s3 = scalar_select %p59_p12, %s613_s14, %s61_s6  }
  0x29   : > { %s144_s0 = sadd.s32 %s625_s17, %s322_s29  ;;  %s140_s4 = scalar_lea.vmem [#allocation6], %s321_s21 }
  0x2a   : > { %s150_s25 = sshll.u32 %s140_s4, 4  ;;  %s323_s9 = sshll.u32 %s144_s0, 3  ;;  %s151_s25 = int_to_ptr.vmem [resolvable:$true] %s150_s25 }
  0x2b   : > { %s146_s16 = scalar_lea.hbm %s845_s1, %s323_s9  ;;  %p346_p13 = pnand %p354_p8, %p754_p5 }
  0x2c   : > { %s148_s7 = sshll.u32 %s146_s16, 4  ;;  %s137_s27 = scalar_lea.sflag [#allocation7], %s136_s20  ;;  %s149_s7 = int_to_ptr.hbm [resolvable:$true] %s148_s7 }
  0x2d   : > { %348 = dma.hbm_to_vmem [thread:$0]  (!%p346_p13), %s149_s7, 128, %s151_s25, %s137_s27  }
  0x2e   : > { %159 = sbr.rel (%p732_p11) target bundleno = 86 (0x56), region = 28 }
  0x33   : > { %580 = dma.done.wait (%p708_p1), [#allocation4], 128  }
  0x34   : > { %582 = vsyncadd (%p708_p1), [#allocation4], 4294967168  ;;  %s166_s0 = sand.u32 1, %s609_s13  }
  0x35   : > { %s326_s2 = sshll.u32 %s166_s0, 3  ;;  %s167_s9 = scalar_lea.sflag [#allocation7], %s166_s0 }
  0x36   : > { %s170_s24 = scalar_lea.vmem [#allocation6], %s326_s2 }
  0x37   : > { %584 = dma.done.wait (%p716_p4), %s167_s9, 128  }
  0x38   : > { %586 = vsyncadd (%p716_p4), %s167_s9, 4294967168  ;;  %s189_s16 = sand.u32 1, %s597_s10   ;;  %p328_p11 = scmp.ne.s32.totalorder %s617_s15, 0 }
  0x39   : > { %s327_s25 = sshll.u32 %s189_s16, 3 }
  0x3a   : > { %s191_s26 = scalar_lea.vmem [#allocation8], %s327_s25  ;;  %195 = sbr.rel (%p328_p11) target bundleno = 65 (0x41), region = 40 }
  0x3f   : > { %v636_v0 = vmov 0.0  }
  0x40   : > { %196 = vst [vmem:[#allocation2] sm:$0xff] %v636_v0 }
  0x41 PF: > { %s867_s22 = sld [smem:[#allocation13_spill]]  ;;  %v198_v2 = vld [vmem:[%s170_s24] sm:$0xff]  ;;  %v199_v3 = vld [vmem:[#allocation3] sm:$0xff]  ;;  %s218_s28 = sshll.u32 %s191_s26, 4  ;;  %s219_s28 = int_to_ptr.vmem [resolvable:$true] %s218_s28 }
  0x42   : > { %v200_v4 = vadd.f32 %v199_v3, %v198_v2  ;;  %s869_s12 = sld [smem:[#allocation18_spill]]  ;;  %s206_s15 = scalar_lea.sflag [#allocation5], %s189_s16 }
  0x47   : > { %v197_v1 = vld [vmem:[#allocation2] sm:$0xff]  ;;  %s330_s6 = sshll.u32 %s867_s22, 3 }
  0x48   : > { %s870_s20 = smov %s869_s12  ;;  %s216_s21 = scalar_lea.hbm %s869_s12, %s330_s6  ;;  %v201_v5 = vadd.f32 %v200_v4, %v197_v1 }
  0x49   : > { %s220_s29 = sshll.u32 %s216_s21, 4  ;;  %s527_s9 = scalar_lea.hbm %s870_s20, 16  ;;  %s221_s29 = int_to_ptr.hbm [resolvable:$true] %s220_s29 }
  0x4a   : > { %202 = vst [vmem:[#allocation2] sm:$0xff] %v201_v5  ;;  %s521_s7 = sshra.s32 %s221_s29, 4  ;;  %s522_s7 = int_to_ptr.hbm [resolvable:$true] %s521_s7 }
  0x4b   : > { %204 = vst [vmem:[%s191_s26] sm:$0xff] %v201_v5  ;;  %s523_s27 = scalar_lea.hbm %s522_s7, 8  ;;  %p528_p2 = scmp.lt.s32.totalorder %s522_s7, %s870_s20 }
  0x4c   : > { %p524_p1 = scmp.ne.s32.totalorder %s522_s7, %s523_s27  ;;  %p529_p3 = scmp.lt.s32.totalorder %s527_s9, %s523_s27 }
  0x4e   : > { %p525_p4 = pnand %p524_p1, %p722_p6  ;;  %p530_p5 = por %p529_p3, %p528_p2 }
  0x50   : > { %p526_p0 = pneg %p525_p4 }
  0x52   : > { %p531_p7 = pnand %p530_p5, %p526_p0 }
  0x54   : > { %534 = shalt.err (!%p531_p7)
}
  0x55   : > { %339 = dma.vmem_to_hbm [thread:$0]  (%p722_p6), %s219_s28, 128, %s221_s29, %s206_s15  }
  0x56 PF: > { %s871_s16 = sld [smem:[#allocation12_spill]]  ;;  %p356_p8 = scmp.ge.s32.totalorder %s633_s19, 2 }
  0x58   : > { %p350_p9 = pnand %p356_p8, %p728_p10 }
  0x5a   : > { %p351_p12 = pneg %p350_p9 }
  0x5c   : > { %s232_s22 = sand.u32 1, %s871_s16  }
  0x5d   : > { %s233_s6 = scalar_lea.sflag [#allocation5], %s232_s22 }
  0x5e   : > { %588 = dma.done.wait (%p351_p12), %s233_s6, 128  }
  0x5f   : > { %590 = vsyncadd (%p351_p12), %s233_s6, 4294967168  ;;  %s19_s19 = sadd.s32 1, %s633_s19   ;;  %s873_s4 = sld [smem:[#allocation16_spill]] }
  0x60   : > { %p16_p13 = scmp.ge.s32.totalorder %s19_s19, 6   ;;  %s874_s9 = smov %s597_s10 }
  0x61   : > { %s875_s10 = smov %s601_s11  ;;  %s876_s11 = smov %s767_s30 }
  0x62   : > { %s877_s12 = smov %s609_s13  ;;  %s878_s13 = smov %s613_s14 }
  0x63   : > { %s879_s14 = smov %s770_s3  ;;  %s880_s15 = smov %s625_s17 }
  0x64   : > { %s881_s16 = smov %s629_s18  ;;  %s883_s18 = smov %s889_s5 }
  0x65   : > { %s882_s17 = smov %s873_s4  ;;  %18 = sbr.rel (!%p16_p13) target bundleno = 13 (0xd), region = 82 }
  0x6a   :  { %239 = vsyncpa [#allocation4], 1 }
  0x6b   :  { %241 = vsyncpa [#allocation4 + $0x1], 1 }
  0x6c   :  { %242 = vsyncpa [#allocation7], 1 }
  0x6d   :  { %244 = vsyncpa [#allocation7 + $0x1], 1 }
  0x6e   :  { %245 = vsyncpa [#allocation5], 1 }
  0x6f   :  { %247 = vsyncpa [#allocation5 + $0x1], 1 }

// kernel: tpu_custom_call.1
= control target key start
LH: loop header
LB: loop body
LE: loop exit
PB: predicated region body
PF: predicated region fallthrough
CT: control target
= control target key end

     0   :  { %s2640_s0 = inlined_call_operand.vmem [shape: f32[2,256,64], index: 0, kind: input, shape index: {}]   ;;  %s2641_s1 = inlined_call_operand.vmem [shape: f32[64,64], index: 1, kind: input, shape index: {}]   ;;  %s2642_s2 = inlined_call_operand.vmem [shape: f32[1,64], index: 2, kind: input, shape index: {}]   ;;  %s2643_s3 = inlined_call_operand.vmem [shape: f32[64,256], index: 3, kind: input, shape index: {}]   ;;  %s2644_s4 = inlined_call_operand.vmem [shape: f32[1,256], index: 4, kind: input, shape index: {}]   ;;  %s2645_s5 = inlined_call_operand.vmem [shape: f32[2,128], index: 5, kind: input, shape index: {}]   ;;  %s2646_s6 = inlined_call_operand.vmem [shape: f32[2,1], index: 6, kind: input, shape index: {}]   ;;  %s2647_s7 = inlined_call_operand.hbm [shape: f32[2,1,256], index: 7, kind: output, shape index: {0}]   ;;  %s2648_s8 = inlined_call_operand.vmem [shape: f32[2,1,1,1], index: 8, kind: output, shape index: {1}]   ;;  %s2649_s9 = inlined_call_operand.vmem [shape: f32[2,1,1,1], index: 9, kind: output, shape index: {2}]   ;;  %s2650_s10 = inlined_call_operand.hbm [shape: f32[2,1,1,64], index: 10, kind: output, shape index: {3}]  }
   0x1   :  { %2669 = sst [smem:[#allocation26_spill]] %s2640_s0 }
   0x2   :  { %2670 = sst [smem:[#allocation27_spill]] %s2641_s1 }
   0x3   :  { %2671 = sst [smem:[#allocation28_spill]] %s2647_s7 }
   0x4   :  { %2672 = sst [smem:[#allocation29_spill]] %s2650_s10 }
   0x5   :  { %16 = vsyncpa [#allocation6], 0 }
   0x6   :  { %18 = vsyncpa [#allocation6 + $0x1], 0 }
   0x7   :  { %19 = vsyncpa [#allocation8], 0 }
   0x8   :  { %21 = vsyncpa [#allocation8 + $0x1], 0  ;;  %s1975_s13 = smov 0   ;;  %s1977_s14 = smov 0  }
   0x9   :  { %s1979_s15 = smov 0   ;;  %s1981_s16 = smov 0  }
   0xa   :  { %s1983_s17 = smov 0   ;;  %s1985_s18 = smov 0  }
   0xb   :  { %s1987_s19 = smov 0   ;;  %s1989_s20 = smov 0  }
   0xc   :  { %s1991_s21 = smov 0   ;;  %s1993_s22 = smov 0  }
   0xd   :  { %s1995_s23 = smov 0  }
   0xe LB: > { %2673 = sst [smem:[#allocation11_spill]] %s1875_s13  ;;  %s1481_s24 = sadd.s32 4294967295, %s1915_s23   ;;  %s1915_s23 = sphi %s1995_s23, %s27_s23   ;;  %s1911_s22 = sphi %s1993_s22, %s2729_s22   ;;  %s1907_s21 = sphi %s1991_s21, %s2722_s21   ;;  %s1903_s20 = sphi %s1989_s20, %s2721_s20   ;;  %s1899_s19 = sphi %s1987_s19, %s2720_s19   ;;  %s1895_s18 = sphi %s1985_s18, %s2728_s18   ;;  %s1891_s17 = sphi %s1983_s17, %s2727_s17   ;;  %s1887_s16 = sphi %s1981_s16, %s2726_s16   ;;  %s1883_s15 = sphi %s1979_s15, %s2717_s15   ;;  %s1879_s14 = sphi %s1977_s14, %s2725_s14   ;;  %s1875_s13 = sphi %s1975_s13, %s2724_s13  }
   0xf   : > { %2674 = sst [smem:[#allocation12_spill]] %s1883_s15  ;;  %s1482_s25 = sadd.s32 4294967294, %s1915_s23  }
  0x10   : > { %2675 = sst [smem:[#allocation13_spill]] %s1887_s16  ;;  %s39_s26 = sadd.s32 1, %s1907_s21 }
  0x11   : > { %2676 = sst [smem:[#allocation14_spill]] %s1895_s18  ;;  %s46_s27 = sadd.s32 1, %s1911_s22 }
  0x12   : > { %2677 = sst [smem:[#allocation15_spill]] %s1907_s21  ;;  %p40_p0 = scmp.ge.s32.totalorder %s39_s26, 2 }
  0x13   : > { %2678 = sst [smem:[#allocation16_spill]] %s1911_s22  ;;  %s217_s28 = sadd.s32 1, %s1895_s18 }
  0x14   : > { %2679 = sst [smem:[#allocation17_spill]] %s1915_s23  ;;  %p227_p1 = scmp.ne.s32.totalorder %s1895_s18, %s1891_s17 }
  0x15   : > { %p2037_p2 = scmp.eq.s32.totalorder %s1481_s24, 3  ;;  %s2731_s26 = smov (%p40_p0, %s39_s26), 0 }
  0x16   : > { %2681 = sst [smem:[#allocation18_spill]] %s2731_s26  ;;  %s2733_s27 = smov (!%p40_p0, %s46_s27), %s1911_s22 }
  0x17   : > { %s213_s30 = ssub.s32 %s1907_s21, %s2731_s26  ;;  %p2048_p3 = por %p2037_p2, %p227_p1 }
  0x18   : > { %p48_p4 = scmp.ge.s32.totalorder %s2733_s27, 2  ;;  %p233_p5 = scmp.ne.s32.totalorder %s1891_s17, %s1887_s16 }
  0x19   : > { %s2682_s11 = scalar_select %p2048_p3, 1, 0 }
  0x1a   : > { %p2054_p6 = scmp.eq.s32.totalorder %s1482_s25, 3  ;;  %s301_s24 = sadd.s32 1, %s1883_s15 }
  0x1b   : > { %2683 = sst [smem:[#allocation19_spill]] %s2682_s11  ;;  %s2735_s27 = smov (%p48_p4, %s2733_s27), 0 }
  0x1c   : > { %2685 = sst [smem:[#allocation20_spill]] %s2735_s27  ;;  %p2063_p7 = por %p2054_p6, %p233_p5 }
  0x1d   : > { %p311_p8 = scmp.ne.s32.totalorder %s1883_s15, %s1879_s14  ;;  %s212_s21 = ssub.s32 %s1911_s22, %s2735_s27 }
  0x1e   : > { %s2686_s26 = scalar_select %p2063_p7, 1, 0 }
  0x1f   : > { %p317_p9 = scmp.ne.s32.totalorder %s1879_s14, %s1875_s13  ;;  %s214_s16 = sor.u32 %s213_s30, %s212_s21 }
  0x20   : > { %2687 = sst [smem:[#allocation21_spill]] %s2686_s26  ;;  %p299_p10 = scmp.eq.s32.totalorder %s212_s21, 0 }
  0x21   : > { %p215_p11 = scmp.eq.s32.totalorder %s214_s16, 0  ;;  %p2075_p12 = por %p311_p8, %p2037_p2 }
  0x22   : > { %s2080_s10 = scalar_select %p299_p10, %s1883_s15, %s301_s24  }
  0x23   : > { %s2688_s25 = scalar_select %p2075_p12, 1, 0 }
  0x24   : > { %2690 = sst [smem:[#allocation23_spill]] %s2080_s10  ;;  %p2087_p13 = por %p317_p9, %p2054_p6 }
  0x25   : > { %2689 = sst [smem:[#allocation22_spill]] %s2688_s25  ;;  %p1485_p0 = scmp.ge.s32.totalorder %s1915_s23, 1 }
  0x26   : > { %s2083_s7 = scalar_select %p215_p11, %s1895_s18, %s217_s28  }
  0x27   : > { %s2692_s11 = scalar_select %p2087_p13, 1, 0 }
  0x28   : > { %2691 = sst [smem:[#allocation24_spill]] %s2083_s7  ;;  %p371_p1 = scmp.lt.s32.totalorder %s1915_s23, 5 }
  0x29   : > { %2693 = sst [smem:[#allocation25_spill]] %s2692_s11 }
  0x2a   : > { %p372_p4 = pnand %p1485_p0, %p371_p1 }
  0x2b   : > { %s1486_s28 = sshll.u32 (!%p372_p4), %s1899_s19, 4  ;;  %p433_p2 = scmp.lt.s32.totalorder (!%p372_p4), %s1903_s20, 1 }
  0x2c   : > { %375 = sbr.rel (%p372_p4) target bundleno = 1117 (0x45d), region = 48  ;;  %p435_p5 = scmp.lt.s32.totalorder (!%p372_p4), %s1486_s28, 31 }
  0x2d   : > { %s2694_s0 = sld [smem:[#allocation26_spill]] (!%p372_p4)  ;;  %s2695_s13 = sand.u32 (!%p372_p4), 1, %s1891_s17  }
  0x2e   : > { %s2116_s26 = scalar_lea.vmem (!%p372_p4), [#allocation5], %s2695_s13  ;;  %s2696_s23 = sand.u32 (!%p372_p4), 1, %s1879_s14  }
  0x2f   : > { %s2120_s25 = scalar_lea.vmem (!%p372_p4), [#allocation7], %s2696_s23  ;;  %p1489_p6 = scmp.ne.s32.totalorder (!%p372_p4), %s1899_s19, 0 }
  0x31   : > { %s2098_s29 = scalar_select %p433_p2, %s1903_s20, 1 }
  0x32   : > { %s2737_s28 = smov (!%p435_p5, %s1486_s28), 31  ;;  %461 = sbr.rel (%p1489_p6) target bundleno = 59 (0x3b), region = 52 }
  0x33   : > { %s1487_s30 = sshll.u32 %s2098_s29, 5  ;;  %s451_s27 = scalar_lea.vmem %s2648_s8, %s2098_s29 }
  0x34   : > { %s438_s22 = sadd.s32 %s1487_s30, %s2737_s28  ;;  %s457_s16 = scalar_lea.vmem %s2649_s9, %s2098_s29 }
  0x35   : > { %s1488_s21 = sshll.u32 %s438_s22, 3 }
  0x36   : > { %s2112_s11 = scalar_lea.vmem %s2694_s0, %s1488_s21 }
  0x37   : > { %vm462_vm0 = vcmask 0   ;;  %vm465_vm1 = vcmask 516096   ;;  %v1917_v0 = vmov -1e+30   ;;  %v1918_v1 = vmov 0.0  }
  0x38   : > { %463 = vst.msk [vmem:[#allocation2] sm:$0x1] %vm462_vm0, %v1917_v0 }
  0x39   : > { %464 = vst.msk [vmem:[#allocation3] sm:$0x1] %vm462_vm0, %v1918_v1 }
  0x3a   : > { %466 = vst.msk [vmem:[#allocation4] sm:$0x1] %vm465_vm1, %v1918_v1 }
  0x3b PF: > { %s2697_s1 = sld [smem:[#allocation27_spill]]  ;;  %v470_v10 = vld [vmem:[%s2112_s11] sm:$0xff]  ;;  %vm503_vm2 = vcmask 523264   ;;  %v471_v11 = vld [vmem:[%s2112_s11 + $0x8] sm:$0xff]  ;;  %v472_v12 = vld [vmem:[%s2112_s11 + $0x10] sm:$0xff]  ;;  %s1490_s21 = sshll.u32 %s1899_s19, 7 }
  0x3c   : > { %v473_v13 = vld [vmem:[%s2112_s11 + $0x18] sm:$0xff]  ;;  %v474_v14 = vld [vmem:[%s2112_s11 + $0x20] sm:$0xff]  ;;  %v475_v15 = vld [vmem:[%s2112_s11 + $0x28] sm:$0xff]  ;;  %p1555_p8 = scmp.ne.s32.totalorder %s1899_s19, 1 }
  0x3d   : > { %v476_v16 = vld [vmem:[%s2112_s11 + $0x30] sm:$0xff]  ;;  %v477_v17 = vld [vmem:[%s2112_s11 + $0x38] sm:$0xff]  ;;  %v478_v18 = vld [vmem:[%s2112_s11 + $0x40] sm:$0xff] }
  0x3e   : > { %v479_v19 = vld [vmem:[%s2112_s11 + $0x48] sm:$0xff]  ;;  %v480_v20 = vld [vmem:[%s2112_s11 + $0x50] sm:$0xff]  ;;  %v648_v22 = vld [vmem:[%s2643_s3 + $0x78] sm:$0xff] }
  0x3f   : > { %v647_v21 = vld [vmem:[%s2643_s3 + $0x70] sm:$0xff]  ;;  %v645_v23 = vld [vmem:[%s2643_s3 + $0x60] sm:$0xff]  ;;  %776 = vmatpush.msra.mxu2 %v648_v22  ;;  %v646_v24 = vld [vmem:[%s2643_s3 + $0x68] sm:$0xff] }
  0x40   : > { %711 = vmatpush.msra.mxu1 %v647_v21  ;;  %v643_v25 = vld [vmem:[%s2643_s3 + $0x50] sm:$0xff]  ;;  %v644_v26 = vld [vmem:[%s2643_s3 + $0x58] sm:$0xff]  ;;  %v641_v28 = vld [vmem:[%s2643_s3 + $0x40] sm:$0xff] }
  0x41   : > { %v498_v2 = vld [vmem:[%s2697_s1 + $0x38] sm:$0xff]  ;;  %v497_v3 = vld [vmem:[%s2697_s1 + $0x30] sm:$0xff]  ;;  %v496_v4 = vld [vmem:[%s2697_s1 + $0x28] sm:$0xff]  ;;  %777 = vmatpush.msra.mxu2 %v646_v24 }
  0x42   : > { %560 = vmatpush.msra.mxu0 %v498_v2  ;;  %v495_v5 = vld [vmem:[%s2697_s1 + $0x20] sm:$0xff]  ;;  %v494_v6 = vld [vmem:[%s2697_s1 + $0x18] sm:$0xff]  ;;  %v493_v7 = vld [vmem:[%s2697_s1 + $0x10] sm:$0xff]  ;;  %712 = vmatpush.msra.mxu1 %v645_v23 }
  0x43   : > { %v492_v8 = vld [vmem:[%s2697_s1 + $0x8] sm:$0xff]  ;;  %v491_v9 = vld [vmem:[%s2697_s1] sm:$0xff]  ;;  %v481_v27 = vld [vmem:[%s2112_s11 + $0x58] sm:$0xff]  ;;  %778 = vmatpush.msra.mxu2 %v644_v26 }
  0x44   : > { %561 = vmatpush.msra.mxu0 %v497_v3  ;;  %713 = vmatpush.msra.mxu1 %v643_v25  ;;  %v642_v29 = vld [vmem:[%s2643_s3 + $0x48] sm:$0xff]  ;;  %v639_v30 = vld [vmem:[%s2643_s3 + $0x30] sm:$0xff]  ;;  %v640_v31 = vld [vmem:[%s2643_s3 + $0x38] sm:$0xff] }
  0x45   : > { %779 = vmatpush.msra.mxu2 %v642_v29  ;;  %v637_v32 = vld [vmem:[%s2643_s3 + $0x20] sm:$0xff]  ;;  %v638_v33 = vld [vmem:[%s2643_s3 + $0x28] sm:$0xff]  ;;  %v635_v35 = vld [vmem:[%s2643_s3 + $0x10] sm:$0xff] }
  0x46   : > { %562 = vmatpush.msra.mxu0 %v496_v4  ;;  %714 = vmatpush.msra.mxu1 %v641_v28  ;;  %v482_v34 = vld [vmem:[%s2112_s11 + $0x60] sm:$0xff]  ;;  %v636_v36 = vld [vmem:[%s2643_s3 + $0x18] sm:$0xff]  ;;  %v634_v38 = vld [vmem:[%s2643_s3 + $0x8] sm:$0xff] }
  0x47   : > { %780 = vmatpush.msra.mxu2 %v640_v31  ;;  %v633_v37 = vld [vmem:[%s2643_s3] sm:$0xff]  ;;  %v483_v39 = vld [vmem:[%s2112_s11 + $0x68] sm:$0xff]  ;;  %v484_v40 = vld [vmem:[%s2112_s11 + $0x70] sm:$0xff] }
  0x48   : > { %563 = vmatpush.msra.mxu0 %v495_v5  ;;  %715 = vmatpush.msra.mxu1 %v639_v30  ;;  %v485_v41 = vld [vmem:[%s2112_s11 + $0x78] sm:$0xff]  ;;  %v2230_v42 = vld [vmem:[%s2642_s2] ss:$0 sm:$0xff] }
  0x49   : > { %781 = vmatpush.msra.mxu2 %v638_v33  ;;  %v649_v28 = vld [vmem:[%s2644_s4] sm:$0x3] }
  0x4a   : > { %564 = vmatpush.msra.mxu0 %v494_v6  ;;  %716 = vmatpush.msra.mxu1 %v637_v32  ;;  %v2347_v29 = vperm.slane %v649_v28, 1 }
  0x4b   : > { %782 = vmatpush.msra.mxu2 %v636_v36 }
  0x4c   : > { %565 = vmatpush.msra.mxu0 %v493_v7  ;;  %717 = vmatpush.msra.mxu1 %v635_v35 }
  0x4d   : > { %783 = vmatpush.msra.mxu2 %v634_v38 }
  0x4e   : > { %566 = vmatpush.msra.mxu0 %v492_v8  ;;  %718 = vmatpush.msra.mxu1 %v633_v37 }
  0x50   : > { %567 = vmatpush.msra.mxu0 %v491_v9 }
  0x51   : > { %1491 = vmatmul.msk.f32.vlgmr.msra.gmra.mxu0 %vm503_vm2, %v470_v10 }
  0x59   : > { %1492 = vmatmul.msk.f32.gmra.mxu0 %vm503_vm2, %v471_v11 }
  0x61   : > { %1493 = vmatmul.msk.f32.gmra.mxu0 %vm503_vm2, %v472_v12 }
  0x69   : > { %1494 = vmatmul.msk.f32.gmra.mxu0 %vm503_vm2, %v473_v13 }
  0x71   : > { %1495 = vmatmul.msk.f32.gmra.mxu0 %vm503_vm2, %v474_v14 }
  0x79   : > { %1496 = vmatmul.msk.f32.gmra.mxu0 %vm503_vm2, %v475_v15 }
  0x81   : > { %1497 = vmatmul.msk.f32.gmra.mxu0 %vm503_vm2, %v476_v16 }
  0x89   : > { %1498 = vmatmul.msk.f32.gmra.mxu0 %vm503_vm2, %v477_v17 }
  0x91   : > { %1499 = vmatmul.msk.f32.gmra.mxu0 %vm503_vm2, %v478_v18 }
  0x99   : > { %1500 = vmatmul.msk.f32.gmra.mxu0 %vm503_vm2, %v479_v19 }
  0xa1   : > { %1501 = vmatmul.msk.f32.gmra.mxu0 %vm503_vm2, %v480_v20 }
  0xa9   : > { %1502 = vmatmul.msk.f32.gmra.mxu0 %vm503_vm2, %v481_v27 }
  0xb1   : > { %1503 = vmatmul.msk.f32.gmra.mxu0 %vm503_vm2, %v482_v34 }
  0xb9   : > { %1504 = vmatmul.msk.f32.gmra.mxu0 %vm503_vm2, %v483_v39 }
  0xc1   : > { %1505 = vmatmul.msk.f32.gmra.mxu0 %vm503_vm2, %v484_v40  ;;  %v2351_v40 = vperm.slane %v649_v28, 0 }
  0xc9   : > { %1506 = vmatmul.msk.f32.gmra.mxu0 %vm503_vm2, %v485_v41 }
  0xce   : > { %v569_v43 = vpop.f32.mrf.mxu0 }
  0xcf   : > { %v570_v44 = vadd.f32 %v2230_v42, %v569_v43 }
  0xd1   : > { %v2233_v45 = vmax.f32 %v570_v44, 0.0 }
  0xd3   : > { %1507 = vmatmul.msk.f32.vlgmr.msra.gmra.mxu1 %vm503_vm2, %v2233_v45  ;;  %1523 = vmatmul.msk.f32.vlgmr.msra.gmra.mxu2 %vm503_vm2, %v2233_v45 }
  0xd6   : > { %v572_v46 = vpop.f32.mrf.mxu0 }
  0xd7   : > { %v573_v47 = vadd.f32 %v2230_v42, %v572_v46 }
  0xd9   : > { %v2240_v48 = vmax.f32 %v573_v47, 0.0 }
  0xdb   : > { %1508 = vmatmul.msk.f32.gmra.mxu1 %vm503_vm2, %v2240_v48  ;;  %1524 = vmatmul.msk.f32.gmra.mxu2 %vm503_vm2, %v2240_v48 }
  0xde   : > { %v575_v49 = vpop.f32.mrf.mxu0 }
  0xdf   : > { %v576_v50 = vadd.f32 %v2230_v42, %v575_v49 }
  0xe1   : > { %v2247_v51 = vmax.f32 %v576_v50, 0.0 }
  0xe3   : > { %1509 = vmatmul.msk.f32.gmra.mxu1 %vm503_vm2, %v2247_v51  ;;  %1525 = vmatmul.msk.f32.gmra.mxu2 %vm503_vm2, %v2247_v51 }
  0xe6   : > { %v578_v52 = vpop.f32.mrf.mxu0 }
  0xe7   : > { %v579_v53 = vadd.f32 %v2230_v42, %v578_v52 }
  0xe9   : > { %v2254_v54 = vmax.f32 %v579_v53, 0.0 }
  0xeb   : > { %1510 = vmatmul.msk.f32.gmra.mxu1 %vm503_vm2, %v2254_v54  ;;  %1526 = vmatmul.msk.f32.gmra.mxu2 %vm503_vm2, %v2254_v54 }
  0xee   : > { %v581_v55 = vpop.f32.mrf.mxu0 }
  0xef   : > { %v582_v56 = vadd.f32 %v2230_v42, %v581_v55 }
  0xf1   : > { %v2261_v57 = vmax.f32 %v582_v56, 0.0 }
  0xf3   : > { %1511 = vmatmul.msk.f32.gmra.mxu1 %vm503_vm2, %v2261_v57  ;;  %1527 = vmatmul.msk.f32.gmra.mxu2 %vm503_vm2, %v2261_v57 }
  0xf6   : > { %v584_v58 = vpop.f32.mrf.mxu0 }
  0xf7   : > { %v585_v59 = vadd.f32 %v2230_v42, %v584_v58 }
  0xf9   : > { %v2268_v60 = vmax.f32 %v585_v59, 0.0 }
  0xfb   : > { %1512 = vmatmul.msk.f32.gmra.mxu1 %vm503_vm2, %v2268_v60  ;;  %1528 = vmatmul.msk.f32.gmra.mxu2 %vm503_vm2, %v2268_v60 }
  0xfe   : > { %v587_v61 = vpop.f32.mrf.mxu0 }
  0xff   : > { %v588_v62 = vadd.f32 %v2230_v42, %v587_v61 }
 0x101   : > { %v2275_v63 = vmax.f32 %v588_v62, 0.0 }
 0x103   : > { %1513 = vmatmul.msk.f32.gmra.mxu1 %vm503_vm2, %v2275_v63  ;;  %1529 = vmatmul.msk.f32.gmra.mxu2 %vm503_vm2, %v2275_v63 }
 0x106   : > { %v590_v0 = vpop.f32.mrf.mxu0 }
 0x107   : > { %v591_v1 = vadd.f32 %v2230_v42, %v590_v0 }
 0x109   : > { %v2282_v2 = vmax.f32 %v591_v1, 0.0 }
 0x10b   : > { %1514 = vmatmul.msk.f32.gmra.mxu1 %vm503_vm2, %v2282_v2  ;;  %1530 = vmatmul.msk.f32.gmra.mxu2 %vm503_vm2, %v2282_v2 }
 0x10e   : > { %v593_v3 = vpop.f32.mrf.mxu0 }
 0x10f   : > { %v594_v4 = vadd.f32 %v2230_v42, %v593_v3 }
 0x111   : > { %v2289_v5 = vmax.f32 %v594_v4, 0.0 }
 0x113   : > { %1515 = vmatmul.msk.f32.gmra.mxu1 %vm503_vm2, %v2289_v5  ;;  %1531 = vmatmul.msk.f32.gmra.mxu2 %vm503_vm2, %v2289_v5 }
 0x116   : > { %v596_v6 = vpop.f32.mrf.mxu0 }
 0x117   : > { %v597_v7 = vadd.f32 %v2230_v42, %v596_v6 }
 0x119   : > { %v2296_v8 = vmax.f32 %v597_v7, 0.0 }
 0x11b   : > { %1516 = vmatmul.msk.f32.gmra.mxu1 %vm503_vm2, %v2296_v8  ;;  %1532 = vmatmul.msk.f32.gmra.mxu2 %vm503_vm2, %v2296_v8 }
 0x11e   : > { %v599_v9 = vpop.f32.mrf.mxu0 }
 0x11f   : > { %v600_v10 = vadd.f32 %v2230_v42, %v599_v9 }
 0x121   : > { %v2303_v11 = vmax.f32 %v600_v10, 0.0 }
 0x123   : > { %1517 = vmatmul.msk.f32.gmra.mxu1 %vm503_vm2, %v2303_v11  ;;  %1533 = vmatmul.msk.f32.gmra.mxu2 %vm503_vm2, %v2303_v11 }
 0x126   : > { %v602_v12 = vpop.f32.mrf.mxu0 }
 0x127   : > { %v603_v13 = vadd.f32 %v2230_v42, %v602_v12 }
 0x129   : > { %v2310_v14 = vmax.f32 %v603_v13, 0.0 }
 0x12b   : > { %1518 = vmatmul.msk.f32.gmra.mxu1 %vm503_vm2, %v2310_v14  ;;  %1534 = vmatmul.msk.f32.gmra.mxu2 %vm503_vm2, %v2310_v14 }
 0x12e   : > { %v605_v15 = vpop.f32.mrf.mxu0 }
 0x12f   : > { %v606_v16 = vadd.f32 %v2230_v42, %v605_v15 }
 0x131   : > { %v2317_v17 = vmax.f32 %v606_v16, 0.0 }
 0x133   : > { %1519 = vmatmul.msk.f32.gmra.mxu1 %vm503_vm2, %v2317_v17  ;;  %1535 = vmatmul.msk.f32.gmra.mxu2 %vm503_vm2, %v2317_v17 }
 0x136   : > { %v608_v18 = vpop.f32.mrf.mxu0 }
 0x137   : > { %v609_v19 = vadd.f32 %v2230_v42, %v608_v18 }
 0x139   : > { %v2324_v20 = vmax.f32 %v609_v19, 0.0 }
 0x13b   : > { %1520 = vmatmul.msk.f32.gmra.mxu1 %vm503_vm2, %v2324_v20  ;;  %1536 = vmatmul.msk.f32.gmra.mxu2 %vm503_vm2, %v2324_v20 }
 0x13e   : > { %v611_v21 = vpop.f32.mrf.mxu0 }
 0x13f   : > { %v612_v22 = vadd.f32 %v2230_v42, %v611_v21 }
 0x141   : > { %v2331_v23 = vmax.f32 %v612_v22, 0.0 }
 0x143   : > { %1521 = vmatmul.msk.f32.gmra.mxu1 %vm503_vm2, %v2331_v23  ;;  %1537 = vmatmul.msk.f32.gmra.mxu2 %vm503_vm2, %v2331_v23 }
 0x146   : > { %v614_v24 = vpop.f32.mrf.mxu0 }
 0x147   : > { %v615_v25 = vadd.f32 %v2230_v42, %v614_v24 }
 0x149   : > { %v2338_v26 = vmax.f32 %v615_v25, 0.0 }
 0x14b   : > { %1522 = vmatmul.msk.f32.gmra.mxu1 %vm503_vm2, %v2338_v26  ;;  %1538 = vmatmul.msk.f32.gmra.mxu2 %vm503_vm2, %v2338_v26 }
 0x150   : > { %v720_v27 = vpop.f32.mrf.mxu1 }
 0x151   : > { %v721_v49 = vadd.f32 %v720_v27, %v2351_v40 }
 0x156   : > { %v785_v30 = vpop.f32.mrf.mxu2 }
 0x157   : > { %v786_v31 = vadd.f32 %v785_v30, %v2347_v29 }
 0x158   : > { %v723_v32 = vpop.f32.mrf.mxu1 }
 0x159   : > { %v1539_v33 = vmul.f32 -1.442695, %v786_v31  ;;  %v724_v6 = vadd.f32 %v723_v32, %v2351_v40 }
 0x15b   : > { %1665 = vpow2.f32 %v1539_v33 }
 0x15e   : > { %v788_v34 = vpop.f32.mrf.mxu2 }
 0x15f   : > { %v789_v35 = vadd.f32 %v788_v34, %v2347_v29 }
 0x160   : > { %v726_v36 = vpop.f32.mrf.mxu1 }
 0x161   : > { %v1666_v37 = vpop.eup %1665  ;;  %v1540_v38 = vmul.f32 -1.442695, %v789_v35  ;;  %v727_v32 = vadd.f32 %v726_v36, %v2351_v40 }
 0x162   : > { %v897_v39 = vadd.f32 1.0, %v1666_v37 }
 0x163   : > { %1667 = vpow2.f32 %v1540_v38 }
 0x164   : > { %1669 = vrcp.f32 %v897_v39  ;;  %v924_v59 = vand.u32 2147483648, %v897_v39  ;;  %v922_v62 = vand.u32 2147483647, %v897_v39  ;;  %vm918_vm4 = vweird.f32 %v897_v39 }
 0x166   : > { %v791_v41 = vpop.f32.mrf.mxu2  ;;  %v925_v12 = vor.u32 1.1754944e-38, %v924_v59  ;;  %vm923_vm6 = vcmp.eq.f32.partialorder %v922_v62, 8.507059e+37 }
 0x167   : > { %v792_v42 = vadd.f32 %v791_v41, %v2347_v29 }
 0x168   : > { %v2354_v43 = vpop.f32.mrf.mxu1 }
 0x169   : > { %v1668_v44 = vpop.eup %1667  ;;  %v1541_v46 = vmul.f32 -1.442695, %v792_v42 }
 0x16a   : > { %v1670_v47 = vpop.eup %1669  ;;  %v898_v50 = vadd.f32 1.0, %v1668_v44 }
 0x16b   : > { %1671 = vpow2.f32 %v1541_v46  ;;  %v914_v52 = vmul.f32 %v1670_v47, %v897_v39  ;;  %vm919_vm3 = vweird.f32 %v1670_v47 }
 0x16c   : > { %1673 = vrcp.f32 %v898_v50  ;;  %vm920_vm5 = vmor %vm918_vm4, %vm919_vm3  ;;  %v939_v24 = vand.u32 2147483648, %v898_v50  ;;  %v937_v25 = vand.u32 2147483647, %v898_v50  ;;  %vm933_vm8 = vweird.f32 %v898_v50 }
 0x16d   : > { %v915_v53 = vsub.f32 1.0, %v914_v52  ;;  %1675 = vtanh.f32 %v721_v49 }
 0x16e   : > { %v794_v55 = vpop.f32.mrf.mxu2  ;;  %v940_v38 = vor.u32 1.1754944e-38, %v939_v24  ;;  %vm938_vm10 = vcmp.eq.f32.partialorder %v937_v25, 8.507059e+37 }
 0x16f   : > { %v795_v56 = vadd.f32 %v794_v55, %v2347_v29  ;;  %v916_v58 = vmul.f32 %v1670_v47, %v915_v53 }
 0x170   : > { %v2358_v61 = vpop.f32.mrf.mxu1 }
 0x171   : > { %v1672_v0 = vpop.eup %1671  ;;  %v1542_v1 = vmul.f32 -1.442695, %v795_v56  ;;  %v917_v3 = vadd.f32 %v1670_v47, %v916_v58  ;;  %v730_v58 = vadd.f32 %v2354_v43, %v2351_v40  ;;  %v733_v24 = vadd.f32 %v2358_v61, %v2351_v40 }
 0x172   : > { %v1674_v4 = vpop.eup %1673  ;;  %v899_v7 = vadd.f32 1.0, %v1672_v0 }
 0x173   : > { %1677 = vpow2.f32 %v1542_v1  ;;  %v929_v9 = vmul.f32 %v1674_v4, %v898_v50  ;;  %v921_v10 = vsel %vm920_vm5, %v1670_v47, %v917_v3  ;;  %v1676_v13 = vpop.eup %1675  ;;  %vm934_vm7 = vweird.f32 %v1674_v4 }
 0x174   : > { %1679 = vrcp.f32 %v899_v7  ;;  %v926_v16 = vsel %vm923_vm6, %v925_v12, %v921_v10  ;;  %vm935_vm9 = vmor %vm933_vm8, %vm934_vm7  ;;  %v954_v49 = vand.u32 2147483648, %v899_v7  ;;  %v952_v50 = vand.u32 2147483647, %v899_v7 }
 0x175   : > { %v930_v15 = vsub.f32 1.0, %v929_v9  ;;  %1681 = vtanh.f32 %v724_v6  ;;  %v2361_v19 = vmul.f32 %v1676_v13, %v926_v16  ;;  %vm948_vm12 = vweird.f32 %v899_v7 }
 0x176   : > { %v797_v18 = vpop.f32.mrf.mxu2  ;;  %v955_v1 = vor.u32 1.1754944e-38, %v954_v49  ;;  %vm953_vm14 = vcmp.eq.f32.partialorder %v952_v50, 8.507059e+37 }
 0x177   : > { %v798_v21 = vadd.f32 %v797_v18, %v2347_v29  ;;  %v931_v22 = vmul.f32 %v1674_v4, %v930_v15 }
 0x178   : > { %v2365_v34 = vpop.f32.mrf.mxu1 }
 0x179   : > { %v1678_v27 = vpop.eup %1677  ;;  %v1543_v28 = vmul.f32 -1.442695, %v798_v21  ;;  %v932_v30 = vadd.f32 %v1674_v4, %v931_v22  ;;  %v736_v50 = vadd.f32 %v2365_v34, %v2351_v40 }
 0x17a   : > { %v1680_v31 = vpop.eup %1679  ;;  %v900_v33 = vadd.f32 1.0, %v1678_v27 }
 0x17b   : > { %1683 = vpow2.f32 %v1543_v28  ;;  %v944_v35 = vmul.f32 %v1680_v31, %v899_v7  ;;  %v936_v37 = vsel %vm935_vm9, %v1674_v4, %v932_v30  ;;  %v1682_v39 = vpop.eup %1681  ;;  %vm949_vm11 = vweird.f32 %v1680_v31 }
 0x17c   : > { %1685 = vrcp.f32 %v900_v33  ;;  %v941_v42 = vsel %vm938_vm10, %v940_v38, %v936_v37  ;;  %vm950_vm13 = vmor %vm948_vm12, %vm949_vm11  ;;  %v969_v13 = vand.u32 2147483648, %v900_v33  ;;  %v967_v15 = vand.u32 2147483647, %v900_v33 }
 0x17d   : > { %v945_v41 = vsub.f32 1.0, %v944_v35  ;;  %1687 = vtanh.f32 %v727_v32  ;;  %v2367_v46 = vmul.f32 %v1682_v39, %v941_v42  ;;  %vm963_vm0 = vweird.f32 %v900_v33 }
 0x17e   : > { %v800_v44 = vpop.f32.mrf.mxu2  ;;  %v970_v30 = vor.u32 1.1754944e-38, %v969_v13  ;;  %vm968_vm2 = vcmp.eq.f32.partialorder %v967_v15, 8.507059e+37 }
 0x17f   : > { %v801_v47 = vadd.f32 %v800_v44, %v2347_v29  ;;  %v946_v36 = vmul.f32 %v1680_v31, %v945_v41 }
 0x180   : > { %v2372_v4 = vpop.f32.mrf.mxu1 }
 0x181   : > { %v1684_v52 = vpop.eup %1683  ;;  %v1544_v53 = vmul.f32 -1.442695, %v801_v47  ;;  %v947_v55 = vadd.f32 %v1680_v31, %v946_v36 }
 0x182   : > { %v1686_v56 = vpop.eup %1685  ;;  %v901_v59 = vadd.f32 1.0, %v1684_v52 }
 0x183   : > { %1689 = vpow2.f32 %v1544_v53  ;;  %v959_v62 = vmul.f32 %v1686_v56, %v900_v33  ;;  %v951_v0 = vsel %vm950_vm13, %v1680_v31, %v947_v55  ;;  %v1688_v3 = vpop.eup %1687  ;;  %vm964_vm15 = vweird.f32 %v1686_v56 }
 0x184   : > { %1691 = vrcp.f32 %v901_v59  ;;  %v956_v9 = vsel %vm953_vm14, %v955_v1, %v951_v0  ;;  %vm965_vm1 = vmor %vm963_vm0, %vm964_vm15  ;;  %v984_v41 = vand.u32 2147483648, %v901_v59  ;;  %v982_v42 = vand.u32 2147483647, %v901_v59 }
 0x185   : > { %v960_v6 = vsub.f32 1.0, %v959_v62  ;;  %1693 = vtanh.f32 %v730_v58  ;;  %v2374_v7 = vmul.f32 %v1688_v3, %v956_v9  ;;  %vm978_vm4 = vweird.f32 %v901_v59 }
 0x186   : > { %v803_v10 = vpop.f32.mrf.mxu2  ;;  %vm983_vm6 = vcmp.eq.f32.partialorder %v982_v42, 8.507059e+37 }
 0x187   : > { %v804_v12 = vadd.f32 %v803_v10, %v2347_v29  ;;  %v961_v43 = vmul.f32 %v1686_v56, %v960_v6 }
 0x188   : > { %v2379_v37 = vpop.f32.mrf.mxu1 }
 0x189   : > { %v1690_v16 = vpop.eup %1689  ;;  %v1545_v18 = vmul.f32 -1.442695, %v804_v12  ;;  %v962_v21 = vadd.f32 %v1686_v56, %v961_v43 }
 0x18a   : > { %v1692_v22 = vpop.eup %1691  ;;  %v902_v25 = vadd.f32 1.0, %v1690_v16  ;;  %v739_v16 = vadd.f32 %v2372_v4, %v2351_v40 }
 0x18b   : > { %1695 = vpow2.f32 %v1545_v18  ;;  %v974_v27 = vmul.f32 %v1692_v22, %v901_v59  ;;  %v966_v28 = vsel %vm965_vm1, %v1686_v56, %v962_v21  ;;  %v1694_v31 = vpop.eup %1693  ;;  %vm979_vm3 = vweird.f32 %v1692_v22 }
 0x18c   : > { %1697 = vrcp.f32 %v902_v25  ;;  %v971_v35 = vsel %vm968_vm2, %v970_v30, %v966_v28  ;;  %vm980_vm5 = vmor %vm978_vm4, %vm979_vm3  ;;  %v985_v56 = vor.u32 1.1754944e-38, %v984_v41  ;;  %v999_v34 = vand.u32 2147483648, %v902_v25 }
 0x18d   : > { %v975_v32 = vsub.f32 1.0, %v974_v27  ;;  %1699 = vtanh.f32 %v733_v24  ;;  %v2381_v33 = vmul.f32 %v1694_v31, %v971_v35  ;;  %v997_v10 = vand.u32 2147483647, %v902_v25 }
 0x18e   : > { %v806_v38 = vpop.f32.mrf.mxu2  ;;  %vm993_vm8 = vweird.f32 %v902_v25  ;;  %v1000_v24 = vor.u32 1.1754944e-38, %v999_v34 }
 0x18f   : > { %v807_v39 = vadd.f32 %v806_v38, %v2347_v29  ;;  %v976_v61 = vmul.f32 %v1692_v22, %v975_v32  ;;  %vm998_vm10 = vcmp.eq.f32.partialorder %v997_v10, 8.507059e+37 }
 0x190   : > { %v744_v9 = vpop.f32.mrf.mxu1 }
 0x191   : > { %v1696_v44 = vpop.eup %1695  ;;  %v1546_v47 = vmul.f32 -1.442695, %v807_v39  ;;  %v977_v36 = vadd.f32 %v1692_v22, %v976_v61 }
 0x192   : > { %v1698_v49 = vpop.eup %1697  ;;  %v903_v52 = vadd.f32 1.0, %v1696_v44  ;;  %v742_v44 = vadd.f32 %v2379_v37, %v2351_v40 }
 0x193   : > { %1701 = vpow2.f32 %v1546_v47  ;;  %v989_v53 = vmul.f32 %v1698_v49, %v902_v25  ;;  %v981_v55 = vsel %vm980_vm5, %v1692_v22, %v977_v36  ;;  %v1700_v58 = vpop.eup %1699  ;;  %vm994_vm7 = vweird.f32 %v1698_v49 }
 0x194   : > { %1703 = vrcp.f32 %v903_v52  ;;  %v986_v0 = vsel %vm983_vm6, %v985_v56, %v981_v55  ;;  %vm995_vm9 = vmor %vm993_vm8, %vm994_vm7  ;;  %v1014_v4 = vand.u32 2147483648, %v903_v52  ;;  %v1012_v38 = vand.u32 2147483647, %v903_v52 }
 0x195   : > { %v990_v62 = vsub.f32 1.0, %v989_v53  ;;  %1705 = vtanh.f32 %v736_v50  ;;  %v2386_v3 = vmul.f32 %v1700_v58, %v986_v0  ;;  %vm1008_vm12 = vweird.f32 %v903_v52 }
 0x196   : > { %v809_v1 = vpop.f32.mrf.mxu2  ;;  %v1015_v53 = vor.u32 1.1754944e-38, %v1014_v4  ;;  %vm1013_vm14 = vcmp.eq.f32.partialorder %v1012_v38, 8.507059e+37 }
 0x197   : > { %v810_v59 = vadd.f32 %v809_v1, %v2347_v29  ;;  %v991_v6 = vmul.f32 %v1698_v49, %v990_v62 }
 0x198   : > { %v747_v36 = vpop.f32.mrf.mxu1 }
 0x199   : > { %v1702_v12 = vpop.eup %1701  ;;  %v1547_v43 = vmul.f32 -1.442695, %v810_v59  ;;  %v992_v13 = vadd.f32 %v1698_v49, %v991_v6 }
 0x19a   : > { %v1704_v15 = vpop.eup %1703  ;;  %v904_v18 = vadd.f32 1.0, %v1702_v12  ;;  %v745_v12 = vadd.f32 %v744_v9, %v2351_v40 }
 0x19b   : > { %1707 = vpow2.f32 %v1547_v43  ;;  %v1004_v21 = vmul.f32 %v1704_v15, %v903_v52  ;;  %v996_v22 = vsel %vm995_vm9, %v1698_v49, %v992_v13  ;;  %v1706_v27 = vpop.eup %1705  ;;  %vm1009_vm11 = vweird.f32 %v1704_v15 }
 0x19c   : > { %1709 = vrcp.f32 %v904_v18  ;;  %v1001_v30 = vsel %vm998_vm10, %v1000_v24, %v996_v22  ;;  %vm1010_vm13 = vmor %vm1008_vm12, %vm1009_vm11  ;;  %v1029_v37 = vand.u32 2147483648, %v904_v18  ;;  %v1027_v1 = vand.u32 2147483647, %v904_v18 }
 0x19d   : > { %v1005_v28 = vsub.f32 1.0, %v1004_v21  ;;  %1711 = vtanh.f32 %v739_v16  ;;  %v2391_v32 = vmul.f32 %v1706_v27, %v1001_v30  ;;  %vm1023_vm0 = vweird.f32 %v904_v18 }
 0x19e   : > { %v812_v31 = vpop.f32.mrf.mxu2  ;;  %vm1028_vm2 = vcmp.eq.f32.partialorder %v1027_v1, 8.507059e+37 }
 0x19f   : > { %v813_v25 = vadd.f32 %v812_v31, %v2347_v29  ;;  %v1006_v35 = vmul.f32 %v1704_v15, %v1005_v28 }
 0x1a0   : > { %v2401_v16 = vpop.f32.mrf.mxu1 }
 0x1a1   : > { %v1708_v39 = vpop.eup %1707  ;;  %v1548_v61 = vmul.f32 -1.442695, %v813_v25  ;;  %v1007_v41 = vadd.f32 %v1704_v15, %v1006_v35  ;;  %v748_v35 = vadd.f32 %v747_v36, %v2351_v40 }
 0x1a2   : > { %v1710_v42 = vpop.eup %1709  ;;  %v905_v47 = vadd.f32 1.0, %v1708_v39 }
 0x1a3   : > { %1713 = vpow2.f32 %v1548_v61  ;;  %v1019_v49 = vmul.f32 %v1710_v42, %v904_v18  ;;  %v1011_v50 = vsel %vm1010_vm13, %v1704_v15, %v1007_v41  ;;  %v1712_v55 = vpop.eup %1711  ;;  %vm1024_vm15 = vweird.f32 %v1710_v42 }
 0x1a4   : > { %1715 = vrcp.f32 %v905_v47  ;;  %v1016_v58 = vsel %vm1013_vm14, %v1015_v53, %v1011_v50  ;;  %vm1025_vm1 = vmor %vm1023_vm0, %vm1024_vm15  ;;  %v1030_v15 = vor.u32 1.1754944e-38, %v1029_v37  ;;  %v1044_v30 = vand.u32 2147483648, %v905_v47 }
 0x1a5   : > { %v1020_v56 = vsub.f32 1.0, %v1019_v49  ;;  %v2398_v0 = vmul.f32 %v1712_v55, %v1016_v58  ;;  %1717 = vtanh.f32 %v742_v44  ;;  %v1042_v31 = vand.u32 2147483647, %v905_v47 }
 0x1a6   : > { %v2396_v62 = vpop.f32.mrf.mxu2  ;;  %vm1038_vm4 = vweird.f32 %v905_v47  ;;  %v1045_v39 = vor.u32 1.1754944e-38, %v1044_v30 }
 0x1a7   : > { %v1021_v52 = vmul.f32 %v1710_v42, %v1020_v56  ;;  %vm1043_vm6 = vcmp.eq.f32.partialorder %v1042_v31, 8.507059e+37 }
 0x1a8   : > { %v2406_v44 = vpop.f32.mrf.mxu1 }
 0x1a9   : > { %v1714_v59 = vpop.eup %1713  ;;  %v1022_v6 = vadd.f32 %v1710_v42, %v1021_v52 }
 0x1aa   : > { %v1716_v34 = vpop.eup %1715  ;;  %v906_v10 = vadd.f32 1.0, %v1714_v59 }
 0x1ab   : > { %v1034_v43 = vmul.f32 %v1716_v34, %v905_v47  ;;  %v1026_v13 = vsel %vm1025_vm1, %v1710_v42, %v1022_v6  ;;  %v1718_v21 = vpop.eup %1717  ;;  %vm1039_vm3 = vweird.f32 %v1716_v34 }
 0x1ac   : > { %1719 = vrcp.f32 %v906_v10  ;;  %v1031_v24 = vsel %vm1028_vm2, %v1030_v15, %v1026_v13  ;;  %vm1040_vm5 = vmor %vm1038_vm4, %vm1039_vm3  ;;  %v1059_v47 = vand.u32 2147483648, %v906_v10  ;;  %v1057_v55 = vand.u32 2147483647, %v906_v10 }
 0x1ad   : > { %v1035_v22 = vsub.f32 1.0, %v1034_v43  ;;  %v2403_v28 = vmul.f32 %v1718_v21, %v1031_v24  ;;  %1721 = vtanh.f32 %v745_v12  ;;  %vm1053_vm8 = vweird.f32 %v906_v10 }
 0x1ae   : > { %v818_v27 = vpop.f32.mrf.mxu2  ;;  %1723 = vtanh.f32 %v748_v35  ;;  %v1060_v58 = vor.u32 1.1754944e-38, %v1059_v47  ;;  %vm1058_vm10 = vcmp.eq.f32.partialorder %v1057_v55, 8.507059e+37  ;;  %v816_v24 = vadd.f32 %v2396_v62, %v2347_v29 }
 0x1af   : > { %v1036_v18 = vmul.f32 %v1716_v34, %v1035_v22  ;;  %v819_v13 = vadd.f32 %v818_v27, %v2347_v29 }
 0x1b0   : > { %v2412_v6 = vpop.f32.mrf.mxu1 }
 0x1b1   : > { %v1037_v25 = vadd.f32 %v1716_v34, %v1036_v18  ;;  %v1550_v18 = vmul.f32 -1.442695, %v819_v13 }
 0x1b2   : > { %v1720_v9 = vpop.eup %1719 }
 0x1b3   : > { %v1049_v4 = vmul.f32 %v1720_v9, %v906_v10  ;;  %v1041_v38 = vsel %vm1040_vm5, %v1716_v34, %v1037_v25  ;;  %v1722_v61 = vpop.eup %1721  ;;  %vm1054_vm7 = vweird.f32 %v1720_v9  ;;  %v1549_v25 = vmul.f32 -1.442695, %v816_v24 }
 0x1b4   : > { %v1046_v42 = vsel %vm1043_vm6, %v1045_v39, %v1041_v38  ;;  %vm1055_vm9 = vmor %vm1053_vm8, %vm1054_vm7  ;;  %v1724_v52 = vpop.eup %1723 }
 0x1b5   : > { %v1050_v41 = vsub.f32 1.0, %v1049_v4  ;;  %v2408_v50 = vmul.f32 %v1722_v61, %v1046_v42 }
 0x1b6   : > { %v821_v49 = vpop.f32.mrf.mxu2 }
 0x1b7   : > { %v1051_v53 = vmul.f32 %v1720_v9, %v1050_v41  ;;  %v822_v12 = vadd.f32 %v821_v49, %v2347_v29 }
 0x1b8   : > { %v759_v30 = vpop.f32.mrf.mxu1 }
 0x1b9   : > { %v1052_v56 = vadd.f32 %v1720_v9, %v1051_v53  ;;  %v1551_v21 = vmul.f32 -1.442695, %v822_v12 }
 0x1bb   : > { %v1056_v36 = vsel %vm1055_vm9, %v1720_v9, %v1052_v56 }
 0x1bc   : > { %v1061_v37 = vsel %vm1058_vm10, %v1060_v58, %v1056_v36 }
 0x1bd   : > { %v2410_v59 = vmul.f32 %v1724_v52, %v1061_v37 }
 0x1be   : > { %v824_v1 = vpop.f32.mrf.mxu2 }
 0x1bf   : > { %v825_v34 = vadd.f32 %v824_v1, %v2347_v29 }
 0x1c0   : > { %v762_v41 = vpop.f32.mrf.mxu1 }
 0x1c1   : > { %v1552_v43 = vmul.f32 -1.442695, %v825_v34 }
 0x1c3   : > { %1725 = vpow2.f32 %v1552_v43 }
 0x1c6   : > { %v827_v15 = vpop.f32.mrf.mxu2 }
 0x1c7   : > { %v828_v10 = vadd.f32 %v827_v15, %v2347_v29 }
 0x1c8   : > { %v765_v52 = vpop.f32.mrf.mxu1 }
 0x1c9   : > { %v1553_v22 = vmul.f32 -1.442695, %v828_v10  ;;  %v1726_v31 = vpop.eup %1725  ;;  %v766_v43 = vadd.f32 %v765_v52, %v2351_v40 }
 0x1ca   : > { %v2421_v4 = vadd.f32 1.0, %v1726_v31 }
 0x1cb   : > { %1727 = vpow2.f32 %v1553_v22 }
 0x1cc   : > { %1729 = vpow2.f32 %v1551_v21  ;;  %vm1113_vm4 = vweird.f32 %v2421_v4 }
 0x1cd   : > { %1731 = vpow2.f32 %v1550_v18  ;;  %v763_v18 = vadd.f32 %v762_v41, %v2351_v40 }
 0x1ce   : > { %v830_v9 = vpop.f32.mrf.mxu2  ;;  %1733 = vpow2.f32 %v1549_v25 }
 0x1cf   : > { %v831_v35 = vadd.f32 %v830_v9, %v2347_v29 }
 0x1d1   : > { %v1728_v27 = vpop.eup %1727  ;;  %v1554_v38 = vmul.f32 -1.442695, %v831_v35 }
 0x1d2   : > { %v1730_v39 = vpop.eup %1729  ;;  %v2423_v61 = vadd.f32 1.0, %v1728_v27 }
 0x1d3   : > { %1735 = vpow2.f32 %v1554_v38  ;;  %v1732_v62 = vpop.eup %1731  ;;  %v2426_v42 = vadd.f32 1.0, %v1730_v39 }
 0x1d4   : > { %1737 = vrcp.f32 %v2423_v61  ;;  %v2429_v49 = vadd.f32 1.0, %v1732_v62  ;;  %v1734_v29 = vpop.eup %1733  ;;  %vm1128_vm13 = vweird.f32 %v2423_v61  ;;  %v1134_v41 = vand.u32 2147483648, %v2423_v61 }
 0x1d5   : > { %1739 = vrcp.f32 %v2421_v4  ;;  %v2434_v36 = vadd.f32 1.0, %v1734_v29  ;;  %v760_v29 = vadd.f32 %v759_v30, %v2351_v40  ;;  %vm1098_vm8 = vweird.f32 %v2426_v42 }
 0x1d6   : > { %1741 = vrcp.f32 %v2426_v42 }
 0x1d7   : > { %1743 = vrcp.f32 %v2429_v49 }
 0x1d9   : > { %v1736_v53 = vpop.eup %1735 }
 0x1da   : > { %v1738_v47 = vpop.eup %1737  ;;  %v912_v55 = vadd.f32 1.0, %v1736_v53 }
 0x1db   : > { %v2432_v56 = vpop.eup %1739  ;;  %v1124_v58 = vmul.f32 %v1738_v47, %v2423_v61  ;;  %vm1129_vm11 = vweird.f32 %v1738_v47 }
 0x1dc   : > { %1745 = vrcp.f32 %v912_v55  ;;  %v1109_v37 = vmul.f32 %v2432_v56, %v2421_v4  ;;  %v2440_v1 = vpop.eup %1741  ;;  %v1149_v9 = vand.u32 2147483648, %v912_v55  ;;  %v1147_v39 = vand.u32 2147483647, %v912_v55  ;;  %vm2459_vm15 = vmor %vm1128_vm13, %vm1129_vm11 }
 0x1dd   : > { %1747 = vrcp.f32 %v2434_v36  ;;  %v1125_v34 = vsub.f32 1.0, %v1124_v58  ;;  %v2443_v12 = vpop.eup %1743  ;;  %v1094_v10 = vmul.f32 %v2440_v1, %v2426_v42  ;;  %vm1143_vm14 = vweird.f32 %v912_v55 }
 0x1de   : > { %v1110_v15 = vsub.f32 1.0, %v1109_v37  ;;  %1749 = vtanh.f32 %v766_v43  ;;  %v1079_v25 = vmul.f32 %v2443_v12, %v2429_v49  ;;  %v1132_v37 = vand.u32 2147483647, %v2423_v61 }
 0x1df   : > { %v1126_v22 = vmul.f32 %v1738_v47, %v1125_v34  ;;  %v1095_v27 = vsub.f32 1.0, %v1094_v10  ;;  %1751 = vtanh.f32 %v763_v18  ;;  %v1150_v34 = vor.u32 1.1754944e-38, %v1149_v9 }
 0x1e0   : > { %v1111_v35 = vmul.f32 %v2432_v56, %v1110_v15  ;;  %vm1114_vm1 = vweird.f32 %v2432_v56  ;;  %v1080_v43 = vsub.f32 1.0, %v1079_v25  ;;  %vm1148_vm2 = vcmp.eq.f32.partialorder %v1147_v39, 8.507059e+37 }
 0x1e1   : > { %v1127_v62 = vadd.f32 %v1738_v47, %v1126_v22  ;;  %v1096_v30 = vmul.f32 %v2440_v1, %v1095_v27  ;;  %v1135_v18 = vor.u32 1.1754944e-38, %v1134_v41  ;;  %vm1133_vm3 = vcmp.eq.f32.partialorder %v1132_v37, 8.507059e+37  ;;  %vm2476_vm5 = vmor %vm1113_vm4, %vm1114_vm1 }
 0x1e2   : > { %v1746_v13 = vpop.eup %1745  ;;  %v1117_v9 = vand.u32 2147483647, %v2421_v4  ;;  %v757_v25 = vadd.f32 %v2412_v6, %v2351_v40  ;;  %1753 = vtanh.f32 %v760_v29  ;;  %vm1099_vm6 = vweird.f32 %v2440_v1 }
 0x1e3   : > { %v1139_v21 = vmul.f32 %v1746_v13, %v912_v55  ;;  %v2448_v24 = vpop.eup %1747  ;;  %vm1144_vm12 = vweird.f32 %v1746_v13  ;;  %v1112_v55 = vadd.f32 %v2432_v56, %v1111_v35  ;;  %v1081_v6 = vmul.f32 %v2443_v12, %v1080_v43  ;;  %vm2491_vm9 = vmor %vm1098_vm8, %vm1099_vm6 }
 0x1e4   : > { %v1064_v53 = vmul.f32 %v2448_v24, %v2434_v36  ;;  %vm1145_vm0 = vmor %vm1143_vm14, %vm1144_vm12  ;;  %v1750_v15 = vpop.eup %1749  ;;  %vm1118_vm7 = vcmp.eq.f32.partialorder %v1117_v9, 8.507059e+37  ;;  %v1102_v41 = vand.u32 2147483647, %v2426_v42  ;;  %1755 = vtanh.f32 %v757_v25 }
 0x1e5   : > { %v1140_v31 = vsub.f32 1.0, %v1139_v21  ;;  %v1131_v21 = vsel %vm2459_vm15, %v1738_v47, %v1127_v62  ;;  %v1752_v27 = vpop.eup %1751  ;;  %v1104_v62 = vand.u32 2147483648, %v2426_v42  ;;  %v1082_v37 = vadd.f32 %v2443_v12, %v1081_v6 }
 0x1e6   : > { %v1065_v35 = vsub.f32 1.0, %v1064_v53  ;;  %v754_v53 = vadd.f32 %v2406_v44, %v2351_v40  ;;  %vm1084_vm10 = vweird.f32 %v2443_v12  ;;  %v1089_v44 = vand.u32 2147483648, %v2429_v49 }
 0x1e7   : > { %v1141_v38 = vmul.f32 %v1746_v13, %v1140_v31  ;;  %v1119_v31 = vand.u32 2147483648, %v2421_v4  ;;  %v1097_v4 = vadd.f32 %v2440_v1, %v1096_v30  ;;  %v1105_v30 = vor.u32 1.1754944e-38, %v1104_v62 }
 0x1e8   : > { %v1066_v42 = vmul.f32 %v2448_v24, %v1065_v35  ;;  %vm1103_vm11 = vcmp.eq.f32.partialorder %v1102_v41, 8.507059e+37  ;;  %vm1083_vm12 = vweird.f32 %v2429_v49  ;;  %1757 = vtanh.f32 %v754_v53 }
 0x1e9   : > { %v1142_v58 = vadd.f32 %v1746_v13, %v1141_v38  ;;  %v1116_v38 = vsel %vm2476_vm5, %v2432_v56, %v1112_v55  ;;  %v1120_v39 = vor.u32 1.1754944e-38, %v1119_v31  ;;  %v1101_v52 = vsel %vm2491_vm9, %v2440_v1, %v1097_v4  ;;  %vm1085_vm13 = vmor %vm1083_vm12, %vm1084_vm10  ;;  %v1225_v4 = vld [vmem:[#allocation4] sm:$0x1] }
 0x1ea   : > { %v1106_v1 = vsel %vm1103_vm11, %v1105_v30, %v1101_v52  ;;  %v1067_v55 = vadd.f32 %v2448_v24, %v1066_v42  ;;  %vm1069_vm14 = vweird.f32 %v2448_v24  ;;  %v1074_v31 = vand.u32 2147483648, %v2434_v36 }
 0x1eb   : > { %v1146_v10 = vsel %vm1145_vm0, %v1746_v13, %v1142_v58  ;;  %v1136_v13 = vsel %vm1133_vm3, %v1135_v18, %v1131_v21  ;;  %v1121_v56 = vsel %vm1118_vm7, %v1120_v39, %v1116_v38  ;;  %v1086_v21 = vsel %vm1085_vm13, %v2443_v12, %v1082_v37 }
 0x1ec   : > { %v1151_v22 = vsel %vm1148_vm2, %v1150_v34, %v1146_v10  ;;  %v1167_v29 = vmul.f32 %v1752_v27, %v1136_v13  ;;  %v1754_v34 = vpop.eup %1753  ;;  %v751_v10 = vadd.f32 %v2401_v16, %v2351_v40  ;;  %v1090_v18 = vor.u32 1.1754944e-38, %v1089_v44 }
 0x1ed   : > { %v1168_v61 = vmul.f32 %v1750_v15, %v1151_v22  ;;  %v1166_v43 = vmul.f32 %v1754_v34, %v1121_v56  ;;  %v1087_v15 = vand.u32 2147483647, %v2429_v49  ;;  %v1756_v22 = vpop.eup %1755  ;;  %vm1068_vm0 = vweird.f32 %v2434_v36 }
 0x1ee   : > { %v1072_v40 = vand.u32 2147483647, %v2434_v36  ;;  %1759 = vtanh.f32 %v751_v10  ;;  %vm1070_vm1 = vmor %vm1068_vm0, %vm1069_vm14  ;;  %v1758_v12 = vpop.eup %1757  ;;  %v1075_v9 = vor.u32 1.1754944e-38, %v1074_v31  ;;  %v1919_v36 = vmov 0  }
 0x1ef   : > { %1176 = vmatpush.xpose.msra.mxu3 %v1168_v61  ;;  %v1165_v61 = vmul.f32 %v1756_v22, %v1106_v1  ;;  %vm1088_vm15 = vcmp.eq.f32.partialorder %v1087_v15, 8.507059e+37  ;;  %v1071_v49 = vsel %vm1070_vm1, %v2448_v24, %v1067_v55  ;;  %1662 = vset.pattern.permute.xlu0 %v1919_v36  ;;  %v1170_v24 = vld [vmem:[%s2646_s6] sm:$0x3]  ;;  %vm1200_vm4 = vcmask 1040384  }
 0x1f0   : > { %v1091_v16 = vsel %vm1088_vm15, %v1090_v18, %v1086_v21  ;;  %vm1073_vm2 = vcmp.eq.f32.partialorder %v1072_v40, 8.507059e+37  ;;  %1663 = vset.pattern.permute.xlu1 %v1919_v36  ;;  %1173 = vperm.xlu0 %1662, %v1170_v24   ;;  %vm1223_vm5 = vcmask 0   ;;  %vm1254_vm6 = vcmask 516096  }
 0x1f1   : > { %v1164_v25 = vmul.f32 %v1758_v12, %v1091_v16  ;;  %v1076_v13 = vsel %vm1073_vm2, %v1075_v9, %v1071_v49 }
 0x1f3   : > { %1177 = vmatpush.xpose.msra.mxu3 %v1167_v29 }
 0x1f4   : > { %v1760_v47 = vpop.eup %1759 }
 0x1f5   : > { %v1163_v35 = vmul.f32 %v1760_v47, %v1076_v13 }
 0x1f7   : > { %1178 = vmatpush.xpose.msra.mxu3 %v1166_v43 }
 0x1fb   : > { %1179 = vmatpush.xpose.msra.mxu3 %v1165_v61 }
 0x1ff   : > { %1180 = vmatpush.xpose.msra.mxu3 %v1164_v25 }
 0x203   : > { %1181 = vmatpush.xpose.msra.mxu3 %v1163_v35 }
 0x207   : > { %1182 = vmatpush.xpose.msra.mxu3 %v2410_v59 }
 0x20b   : > { %1183 = vmatpush.xpose.msra.mxu3 %v2408_v50 }
 0x20f   : > { %1184 = vmatpush.xpose.msra.mxu3 %v2403_v28 }
 0x213   : > { %1185 = vmatpush.xpose.msra.mxu3 %v2398_v0  ;;  %v1217_v0 = vld [vmem:[#allocation3] sm:$0x1] }
 0x217   : > { %1186 = vmatpush.xpose.msra.mxu3 %v2391_v32 }
 0x21b   : > { %1187 = vmatpush.xpose.msra.mxu3 %v2386_v3  ;;  %v1169_v3 = vld [vmem:[%s2645_s5] sm:$0x3] }
 0x21f   : > { %1188 = vmatpush.xpose.msra.mxu3 %v2381_v33 }
 0x223   : > { %1189 = vmatpush.xpose.msra.mxu3 %v2374_v7 }
 0x227   : > { %1190 = vmatpush.xpose.msra.mxu3 %v2367_v46 }
 0x22b   : > { %1191 = vmatpush.xpose.msra.mxu3 %v2361_v19 }
 0x22e   : > { %1192 = vmatmul.f32.vlgmr.msra.gmra.mxu3 %v1169_v3 }
 0x22f   : > { %1233 = vmatpush.msrb.mxu3 %v2338_v26 }
 0x231   : > { %1234 = vmatpush.msrb.mxu3 %v2331_v23 }
 0x233   : > { %1235 = vmatpush.msrb.mxu3 %v2324_v20 }
 0x235   : > { %1236 = vmatpush.msrb.mxu3 %v2317_v17 }
 0x237   : > { %1237 = vmatpush.msrb.mxu3 %v2310_v14 }
 0x239   : > { %1238 = vmatpush.msrb.mxu3 %v2303_v11  ;;  %v488_v11 = vstv %s1490_s21 }
 0x23b   : > { %1239 = vmatpush.msrb.mxu3 %v2296_v8  ;;  %v486_v8 = vlaneseq }
 0x23d   : > { %1240 = vmatpush.msrb.mxu3 %v2289_v5  ;;  %v487_v5 = vand.u32 127, %v486_v8 }
 0x23f   : > { %1241 = vmatpush.msrb.mxu3 %v2282_v2  ;;  %v489_v2 = vadd.s32 %v488_v11, %v487_v5 }
 0x241   : > { %1242 = vmatpush.msrb.mxu3 %v2275_v63  ;;  %vm490_vm3 = vcmp.lt.s32.totalorder %v489_v2, 160 }
 0x243   : > { %1243 = vmatpush.msrb.mxu3 %v2268_v60 }
 0x245   : > { %1244 = vmatpush.msrb.mxu3 %v2261_v57 }
 0x247   : > { %1245 = vmatpush.msrb.mxu3 %v2254_v54 }
 0x249   : > { %1246 = vmatpush.msrb.mxu3 %v2247_v51  ;;  %v1199_v51 = vld [vmem:[#allocation2] sm:$0x1] }
 0x24b   : > { %1247 = vmatpush.msrb.mxu3 %v2240_v48 }
 0x24d   : > { %1248 = vmatpush.msrb.mxu3 %v2233_v45 }
 0x262   : > { %v1174_v14 = vpop.permute.xlu0 %1173 }
 0x2b1   : > { %v1193_v63 = vpop.f32.mrf.mxu3 }
 0x2b2   : > { %v1194_v60 = vadd.f32 %v1193_v63, %v1174_v14 }
 0x2b4   : > { %v1198_v57 = vsel %vm490_vm3, %v1194_v60, -inf }
 0x2b5   : > { %1257 = vst [vmem:[%s2116_s26 - $0x1] sm:$0x2] %v1198_v57  ;;  %v1201_v54 = vsel %vm1200_vm4, %v1198_v57, -inf }
 0x2b6   : > { %1202 = vmax.xlane.f32.xlu0 %v1201_v54 }
 0x329   : > { %v1203_v48 = vpop.xlane.xlu0 %1202 }
 0x32a   : > { %v1204_v17 = vmax.f32 %v1199_v51, %v1203_v48 }
 0x32c   : > { %v1205_v45 = vsub.f32 %v1199_v51, %v1204_v17  ;;  %1256 = vst.msk [vmem:[#allocation2] sm:$0x1] %vm1223_vm5, %v1204_v17  ;;  %1210 = vperm.xlu1 %1663, %v1204_v17  }
 0x32e   : > { %v1206_v20 = vmul.f32 1.442695, %v1205_v45 }
 0x330   : > { %1761 = vpow2.f32 %v1206_v20 }
 0x336   : > { %v1762_v23 = vpop.eup %1761 }
 0x337   : > { %1228 = vperm.xlu1 %1663, %v1762_v23   ;;  %v1218_v28 = vmul.f32 %v1762_v23, %v1217_v0 }
 0x39e   : > { %v1211_v26 = vpop.permute.xlu1 %1210 }
 0x39f   : > { %v1213_v19 = vperm.slane %v1211_v26, 0 }
 0x3a1   : > { %v1214_v46 = vsub.f32 %v1198_v57, %v1213_v19 }
 0x3a3   : > { %v1215_v7 = vmul.f32 1.442695, %v1214_v46 }
 0x3a5   : > { %1763 = vpow2.f32 %v1215_v7 }
 0x3a9   : > { %v1229_v27 = vpop.permute.xlu1 %1228 }
 0x3aa   : > { %v1231_v38 = vperm.slane %v1229_v27, 0 }
 0x3ab   : > { %v1764_v33 = vpop.eup %1763 }
 0x3ac   : > { %1249 = vmatmul.f32.vlgmr.msrb.gmra.mxu3 %v1764_v33  ;;  %v1219_v32 = vsel %vm1200_vm4, %v1764_v33, 0.0  ;;  %v1232_v6 = vmul.f32 %v1231_v38, %v1225_v4 }
 0x3ad   : > { %1220 = vadd.xlane.f32.xlu2 %v1219_v32 }
 0x420   : > { %v1221_v50 = vpop.xlane.xlu2 %1220 }
 0x421   : > { %v1222_v59 = vadd.f32 %v1221_v50, %v1218_v28 }
 0x423   : > { %1224 = vst.msk [vmem:[#allocation3] sm:$0x1] %vm1223_vm5, %v1222_v59 }
 0x42e   : > { %1261 = sbr.rel (%p1555_p8) target bundleno = 1083 (0x43b), region = 56 }
 0x42f   : > { %v1250_v39 = vpop.f32.mrf.mxu3 }
 0x430   : > { %v1253_v62 = vadd.f32 %v1250_v39, %v1232_v6 }
 0x432   : > { %1255 = vst.msk [vmem:[#allocation4] sm:$0x1] %vm1254_vm6, %v1253_v62 }
 0x433   : > { %v1262_v29 = vld [vmem:[#allocation2] sm:$0x1]  ;;  %v1264_v41 = vld [vmem:[#allocation3] sm:$0x1] }
 0x434   : > { %1263 = vst.msk [vmem:[%s451_s27] sm:$0x1] %vm1223_vm5, %v1262_v29 }
 0x435   : > { %1265 = vst.msk [vmem:[%s457_s16] sm:$0x1] %vm1223_vm5, %v1264_v41 }
 0x439   : > { %v1266_v53 = vld [vmem:[#allocation4] sm:$0x1] }
 0x43a   : > { %1267 = vst.msk [vmem:[%s2120_s25] sm:$0x1] %vm1254_vm6, %v1266_v53 }
 0x43b PF: > { %s1556_s10 = sshll.u32 %s1903_s20, 1  ;;  %s1299_s13 = sshll.u32 %s2116_s26, 4  ;;  %s1300_s13 = int_to_ptr.vmem [resolvable:$true] %s1299_s13 }
 0x43c   : > { %s1296_s11 = sadd.s32 %s1899_s19, %s1556_s10  ;;  %s2705_s27 = sld [smem:[#allocation28_spill]] }
 0x43d   : > { %s2706_s21 = sld [smem:[#allocation29_spill]]  ;;  %s2708_s12 = sand.u32 1, %s1891_s17  }
 0x43e   : > { %s1269_s24 = scalar_lea.sflag [#allocation6], %s2708_s12 }
 0x442   : > { %s1297_s22 = scalar_lea.hbm %s2705_s27, %s1296_s11  ;;  %s1785_s10 = scalar_lea.hbm %s2705_s27, 4 }
 0x443   : > { %s1301_s23 = sshll.u32 %s1297_s22, 4  ;;  %s2707_s28 = smov %s2706_s21  ;;  %s1302_s23 = int_to_ptr.hbm [resolvable:$true] %s1301_s23 }
 0x444   : > { %s1317_s30 = scalar_lea.hbm %s2706_s21, %s1903_s20  ;;  %s1779_s0 = sshra.s32 %s1302_s23, 4  ;;  %s1780_s0 = int_to_ptr.hbm [resolvable:$true] %s1779_s0 }
 0x445   : > { %s1781_s1 = scalar_lea.hbm %s1780_s0, 1  ;;  %p1786_p0 = scmp.lt.s32.totalorder %s1780_s0, %s2705_s27 }
 0x446   : > { %p1782_p9 = scmp.ne.s32.totalorder %s1780_s0, %s1781_s1  ;;  %p1787_p1 = scmp.lt.s32.totalorder %s1785_s10, %s1781_s1 }
 0x448   : > { %p1783_p10 = pnand %p1782_p9, %p2048_p3  ;;  %p1788_p4 = por %p1787_p1, %p1786_p0 }
 0x44a   : > { %p1784_p11 = pneg %p1783_p10 }
 0x44c   : > { %p1789_p2 = pnand %p1788_p4, %p1784_p11 }
 0x44e   : > { %1792 = shalt.err (!%p1789_p2)
}
 0x44f   : > { %1559 = dma.vmem_to_hbm [thread:$0]  (%p2048_p3), %s1300_s13, 16, %s1302_s23, %s1269_s24  }
 0x450   : > { %s1319_s18 = sshll.u32 %s2120_s25, 4  ;;  %s1321_s22 = sshll.u32 %s1317_s30, 4  ;;  %s1320_s18 = int_to_ptr.vmem [resolvable:$true] %s1319_s18  ;;  %s1322_s22 = int_to_ptr.hbm [resolvable:$true] %s1321_s22 }
 0x451   : > { %s2710_s29 = sand.u32 1, %s1879_s14   ;;  %s1807_s21 = sshra.s32 %s1322_s22, 4  ;;  %s1808_s21 = int_to_ptr.hbm [resolvable:$true] %s1807_s21 }
 0x452   : > { %s1285_s16 = scalar_lea.sflag [#allocation8], %s2710_s29  ;;  %s1809_s12 = scalar_lea.hbm %s1808_s21, 1 }
 0x453   : > { %p1810_p5 = scmp.ne.s32.totalorder %s1808_s21, %s1809_s12  ;;  %s1813_s7 = scalar_lea.hbm %s2707_s28, 2 }
 0x454   : > { %p1814_p3 = scmp.lt.s32.totalorder %s1808_s21, %s2707_s28  ;;  %p1815_p9 = scmp.lt.s32.totalorder %s1813_s7, %s1809_s12 }
 0x455   : > { %p1811_p6 = pnand %p1810_p5, %p2075_p12 }
 0x456   : > { %p1816_p10 = por %p1815_p9, %p1814_p3 }
 0x457   : > { %p1812_p8 = pneg %p1811_p6 }
 0x459   : > { %p1817_p11 = pnand %p1816_p10, %p1812_p8 }
 0x45b   : > { %1820 = shalt.err (!%p1817_p11)
}
 0x45c   : > { %1560 = dma.vmem_to_hbm [thread:$0]  (%p2075_p12), %s1320_s18, 16, %s1322_s22, %s1285_s16  }
 0x45d PF: > { %s2711_s25 = sld [smem:[#allocation17_spill]] }
 0x45e   : > { %s2712_s13 = sld [smem:[#allocation13_spill]] }
 0x463   : > { %p1570_p0 = scmp.ge.s32.totalorder %s2711_s25, 2 }
 0x464   : > { %s1333_s30 = sand.u32 1, %s2712_s13  }
 0x465   : > { %p1564_p1 = pnand %p1570_p0, %p2063_p7  ;;  %s1334_s24 = scalar_lea.sflag [#allocation6], %s1333_s30 }
 0x467   : > { %p1565_p4 = pneg %p1564_p1 }
 0x469   : > { %1866 = dma.done.wait (%p1565_p4), %s1334_s24, 16  }
 0x46a   : > { %1868 = vsyncadd (%p1565_p4), %s1334_s24, 4294967280  ;;  %s2714_s10 = sld [smem:[#allocation11_spill]]  ;;  %p1567_p2 = pnand %p1570_p0, %p2087_p13 }
 0x46c   : > { %p1568_p5 = pneg %p1567_p2 }
 0x470   : > { %s1360_s15 = sand.u32 1, %s2714_s10  }
 0x471   : > { %s1361_s20 = scalar_lea.sflag [#allocation8], %s1360_s15 }
 0x472   : > { %1870 = dma.done.wait (%p1568_p5), %s1361_s20, 16  }
 0x473   : > { %1872 = vsyncadd (%p1568_p5), %s1361_s20, 4294967280  ;;  %s27_s23 = sadd.s32 1, %s2711_s25   ;;  %s2716_s18 = sld [smem:[#allocation12_spill]] }
 0x474   : > { %p24_p12 = scmp.ge.s32.totalorder %s27_s23, 6   ;;  %s2717_s15 = sld [smem:[#allocation23_spill]] }
 0x475   : > { %s2718_s22 = sld [smem:[#allocation14_spill]]  ;;  %s2724_s13 = smov %s1879_s14 }
 0x476   : > { %s2719_s29 = sld [smem:[#allocation24_spill]]  ;;  %s2726_s16 = smov %s1891_s17 }
 0x477   : > { %s2720_s19 = sld [smem:[#allocation15_spill]] }
 0x478   : > { %s2721_s20 = sld [smem:[#allocation16_spill]] }
 0x479   : > { %s2722_s21 = sld [smem:[#allocation18_spill]]  ;;  %s2725_s14 = smov %s2716_s18 }
 0x47a   : > { %s2723_s12 = sld [smem:[#allocation20_spill]] }
 0x47b   : > { %s2727_s17 = smov %s2718_s22 }
 0x47c   : > { %s2728_s18 = smov %s2719_s29  ;;  %26 = sbr.rel (!%p24_p12) target bundleno = 14 (0xe), region = 132 }
 0x480   : > { %s2729_s22 = smov %s2723_s12 }
 0x481   :  { %1366 = vsyncpa [#allocation6], 1 }
 0x482   :  { %1368 = vsyncpa [#allocation6 + $0x1], 1 }
 0x483   :  { %1369 = vsyncpa [#allocation8], 1 }
 0x484   :  { %1371 = vsyncpa [#allocation8 + $0x1], 1 }

</bundles_post_ra>
